<compile_context>
chip_gen: v7x
topology: tpu7x:2x2x1
jax: 0.10.0
libtpu: 0.0.40
codegen_flags: <defaults>
</compile_context>

<pallas_src>
import jax
import jax.numpy as jnp
from jax.experimental import pallas as pl
from jax.experimental.pallas import tpu as pltpu

# Small, TPU-aligned shapes consistent with the module's config knobs.
EMB_DIM = 128          # config['embedding_dim']  (default 512 in the module)
HID_DIM = 256          # config['hidden_dim']     (default 1024 in the module)
NUM_ACTIONS = 5        # action_head output
ACTION_PAD = 128       # lane-padded action head width (in-kernel only)
POS_HID = 64           # position_head hidden (256 in the module) -- unused in fwd
BATCH = 128            # stacked candidate embeddings (fills MXU rows); row 0
                       # plays the role of the single vector torch argmax().item()s

ACTIONS = ['swipe_up', 'swipe_down', 'swipe_left', 'swipe_right']


def _action_kernel(x_ref, w1_ref, b1_ref, w2_hbm, b2_ref, wa_hbm, ba_ref,
                   probs_ref, feat_ref, idx_ref,
                   w2_vmem, wa_vmem, sem):
    # Kick off the HBM->VMEM fetch of the later-stage weights so it overlaps
    # with the first matmul + GELU (only w1/b1/x block kernel start).
    cp_w2 = pltpu.make_async_copy(w2_hbm, w2_vmem, sem.at[0])
    cp_wa = pltpu.make_async_copy(wa_hbm, wa_vmem, sem.at[1])
    cp_w2.start()
    cp_wa.start()

    # shared_layers: Linear -> GELU -> Linear -> GELU
    # bf16 operands feed the MXU; accumulate + elementwise stay f32.
    x = x_ref[...].astype(jnp.bfloat16)
    h1 = jnp.dot(x, w1_ref[...], preferred_element_type=jnp.float32) + b1_ref[...]
    h1 = jax.nn.gelu(h1, approximate=True)          # tanh -> EUP slot

    cp_w2.wait()
    h2 = jnp.dot(h1.astype(jnp.bfloat16), w2_vmem[...],
                 preferred_element_type=jnp.float32) + b2_ref[...]
    h2 = jax.nn.gelu(h2, approximate=True)
    h2_bf = h2.astype(jnp.bfloat16)
    feat_ref[...] = h2_bf                            # bf16 writeback

    # action_head: Linear(hidden, 5), lane-padded to 128 in VMEM only
    cp_wa.wait()
    scores = jnp.dot(h2_bf, wa_vmem[...],
                     preferred_element_type=jnp.float32) + ba_ref[...]
    col = jax.lax.broadcasted_iota(jnp.int32, scores.shape, dimension=1)
    scores = jnp.where(col < NUM_ACTIONS, scores, -jnp.inf)

    # masked softmax; exp(-inf) is exactly 0 on the padded lanes, EUP reciprocal
    m = jnp.max(scores, axis=-1, keepdims=True)
    e = jnp.exp(scores - m)
    probs = e * pl.reciprocal(jnp.sum(e, axis=-1, keepdims=True), approx=True)
    probs_ref[...] = probs[:, :NUM_ACTIONS]

    # per-row argmax of the masked scores, vector-only (no vreg->sreg move):
    # first lane attaining the row max (ties -> lowest index, like torch.argmax)
    idx = jnp.min(jnp.where(scores == m, col, ACTION_PAD), axis=-1, keepdims=True)
    idx_ref[...] = idx.astype(jnp.int32)


def init_params(key):
    """Deterministic synthetic init of all module parameters.

    Matmul weights are stored bf16 (MXU-native); biases stay f32 (added in the
    f32 elementwise path).  The 5-wide action head is padded to 128 lanes ONCE
    here so the forward pass never rebuilds it.
    """
    ks = jax.random.split(key, 10)
    scale = lambda fan_in: 1.0 / jnp.sqrt(jnp.float32(fan_in))

    wa = jax.random.normal(ks[4], (HID_DIM, NUM_ACTIONS), jnp.float32) * scale(HID_DIM)
    ba = jax.random.normal(ks[5], (1, NUM_ACTIONS), jnp.float32) * 0.01
    wa_pad = jnp.zeros((HID_DIM, ACTION_PAD), jnp.float32).at[:, :NUM_ACTIONS].set(wa)
    ba_pad = jnp.zeros((1, ACTION_PAD), jnp.float32).at[:, :NUM_ACTIONS].set(ba)

    p = {
        # shared_layers
        'w1': (jax.random.normal(ks[0], (EMB_DIM, HID_DIM), jnp.float32)
               * scale(EMB_DIM)).astype(jnp.bfloat16),
        'b1': jax.random.normal(ks[1], (1, HID_DIM), jnp.float32) * 0.01,
        'w2': (jax.random.normal(ks[2], (HID_DIM, HID_DIM), jnp.float32)
               * scale(HID_DIM)).astype(jnp.bfloat16),
        'b2': jax.random.normal(ks[3], (1, HID_DIM), jnp.float32) * 0.01,
        # action_head, pre-padded to 128 lanes
        'wa_pad': wa_pad.astype(jnp.bfloat16),
        'ba_pad': ba_pad,                       # f32, added post-accumulate
        # position_head (defined in __init__, unused in forward)
        'wp1': jax.random.normal(ks[6], (HID_DIM, POS_HID), jnp.float32) * scale(HID_DIM),
        'bp1': jnp.zeros((1, POS_HID), jnp.float32),
        'wp2': jax.random.normal(ks[7], (POS_HID, 2), jnp.float32) * scale(POS_HID),
        'bp2': jnp.zeros((1, 2), jnp.float32),
    }
    return p


def action_model_forward(x, params):
    """x: [B, EMB_DIM] f32 -> (action_probs [B, NUM_ACTIONS] f32,
                               features [B, HID_DIM] bf16,
                               action_idx [B, 1] int32)."""
    B = x.shape[0]
    assert x.shape == (B, EMB_DIM)

    vmem = pl.BlockSpec(memory_space=pltpu.MemorySpace.VMEM)
    hbm = pl.BlockSpec(memory_space=pl.ANY)       # fetched manually in-kernel

    flops = 2 * B * (EMB_DIM * HID_DIM + HID_DIM * HID_DIM + HID_DIM * ACTION_PAD)
    transcendentals = 2 * B * HID_DIM + B * ACTION_PAD + B          # tanh + exp + rcp
    bytes_accessed = (
        B * EMB_DIM * 4                                             # x
        + (EMB_DIM * HID_DIM + HID_DIM * HID_DIM + HID_DIM * ACTION_PAD) * 2  # bf16 W
        + (HID_DIM + HID_DIM + ACTION_PAD) * 4                      # biases
        + B * NUM_ACTIONS * 4 + B * HID_DIM * 2 + B * 4             # outputs
    )

    probs, feats, idx = pl.pallas_call(
        _action_kernel,
        out_shape=(
            jax.ShapeDtypeStruct((B, NUM_ACTIONS), jnp.float32),
            jax.ShapeDtypeStruct((B, HID_DIM), jnp.bfloat16),
            jax.ShapeDtypeStruct((B, 1), jnp.int32),
        ),
        in_specs=[vmem, vmem, vmem, hbm, vmem, hbm, vmem],
        out_specs=(vmem, vmem, vmem),
        scratch_shapes=[
            pltpu.VMEM((HID_DIM, HID_DIM), jnp.bfloat16),    # w2 landing buffer
            pltpu.VMEM((HID_DIM, ACTION_PAD), jnp.bfloat16),  # wa landing buffer
            pltpu.SemaphoreType.DMA((2,)),
        ],
        cost_estimate=pl.CostEstimate(
            flops=int(flops),
            transcendentals=int(transcendentals),
            bytes_accessed=int(bytes_accessed),
        ),
    )(x, params['w1'], params['b1'], params['w2'], params['b2'],
      params['wa_pad'], params['ba_pad'])

    return probs, feats, idx


def choose_actions(action_idx):
    """Host-side post-processing mirroring the torch module's return value."""
    idx = int(action_idx[0, 0])                    # .item() equivalent (row 0)
    chosen = ACTIONS[idx % len(ACTIONS)]
    if chosen == 'swipe_up':
        return [{'type': 'swipe', 'action': 'swipe', 'start': {'x': 0.5, 'y': 0.7},
                 'end': {'x': 0.5, 'y': 0.3}, 'duration': 0.3}]
    if chosen == 'swipe_down':
        return [{'type': 'swipe', 'action': 'swipe', 'start': {'x': 0.5, 'y': 0.3},
                 'end': {'x': 0.5, 'y': 0.7}, 'duration': 0.3}]
    if chosen == 'swipe_left':
        return [{'type': 'swipe', 'action': 'swipe', 'start': {'x': 0.7, 'y': 0.5},
                 'end': {'x': 0.3, 'y': 0.5}, 'duration': 0.3}]
    if chosen == 'swipe_right':
        return [{'type': 'swipe', 'action': 'swipe', 'start': {'x': 0.3, 'y': 0.5},
                 'end': {'x': 0.7, 'y': 0.5}, 'duration': 0.3}]
    return [{'type': 'touch', 'action': 'tap', 'position': {'x': 0.5, 'y': 0.5}}]


if __name__ == "__main__":
    key = jax.random.PRNGKey(0)
    k_param, k_x = jax.random.split(key)
    params = init_params(k_param)
    x = jax.random.normal(k_x, (BATCH, EMB_DIM), jnp.float32)

    action_probs, features, action_idx = action_model_forward(x, params)
    jax.block_until_ready((action_probs, features, action_idx))

    # pure-JAX reference of the same (bf16-matmul / f32-elementwise, tanh-GELU) math
    def ref(x, p):
        h = jnp.dot(x.astype(jnp.bfloat16), p['w1'],
                    preferred_element_type=jnp.float32) + p['b1']
        h = jax.nn.gelu(h, approximate=True)
        h = jnp.dot(h.astype(jnp.bfloat16), p['w2'],
                    preferred_element_type=jnp.float32) + p['b2']
        h = jax.nn.gelu(h, approximate=True)
        s = jnp.dot(h.astype(jnp.bfloat16), p['wa_pad'],
                    preferred_element_type=jnp.float32) + p['ba_pad']
        s = s[:, :NUM_ACTIONS]
        return jax.nn.softmax(s, axis=-1), h

    ref_probs, ref_feats = ref(x, params)

    assert jnp.allclose(action_probs, ref_probs, atol=3e-3), "probs mismatch"
    assert jnp.allclose(features.astype(jnp.float32), ref_feats,
                        atol=2e-2, rtol=2e-2), "features mismatch"
    # in-kernel argmax must agree with argmax over the kernel's own probabilities
    assert bool(jnp.array_equal(action_idx[:, 0],
                                jnp.argmax(action_probs, axis=-1))), "argmax mismatch"
    assert 0 <= int(action_idx[0, 0]) < NUM_ACTIONS

    _ = choose_actions(action_idx)  # host-side action-dict construction
    print("KERNEL_OK")
</pallas_src>

<mosaic_0001>
module attributes {stable_mosaic.version = 11 : i64} {
  func.func @_action_kernel(%arg0: memref<128x128xf32, #tpu.memory_space<vmem>>, %arg1: memref<128x256xbf16, #tpu.memory_space<vmem>>, %arg2: memref<1x256xf32, #tpu.memory_space<vmem>>, %arg3: memref<256x256xbf16, #tpu.memory_space<any>>, %arg4: memref<1x256xf32, #tpu.memory_space<vmem>>, %arg5: memref<256x128xbf16, #tpu.memory_space<any>>, %arg6: memref<1x128xf32, #tpu.memory_space<vmem>>, %arg7: memref<128x5xf32, #tpu.memory_space<vmem>>, %arg8: memref<128x256xbf16, #tpu.memory_space<vmem>>, %arg9: memref<128x1xi32, #tpu.memory_space<vmem>>, %arg10: memref<256x256xbf16, #tpu.memory_space<vmem>>, %arg11: memref<256x128xbf16, #tpu.memory_space<vmem>>, %arg12: memref<2x!tpu.dma_semaphore, #tpu.memory_space<semaphore_mem>>) attributes {dimension_semantics = [], scalar_prefetch = 0 : i64, scratch_operands = 3 : i64, tpu.core_type = #tpu.core_type<tc>} {
    %c0_i32 = arith.constant 0 : i32
    %0 = tpu.memref_slice %arg12[%c0_i32] : memref<2x!tpu.dma_semaphore, #tpu.memory_space<semaphore_mem>> -> memref<1x!tpu.dma_semaphore, #tpu.memory_space<semaphore_mem>>
    %1 = tpu.memref_squeeze %0 : memref<1x!tpu.dma_semaphore, #tpu.memory_space<semaphore_mem>> -> memref<!tpu.dma_semaphore, #tpu.memory_space<semaphore_mem>>
    tpu.enqueue_dma source(%arg3 : memref<256x256xbf16, #tpu.memory_space<any>>) target(%arg10 : memref<256x256xbf16, #tpu.memory_space<vmem>>) target_semaphore(%1 : memref<!tpu.dma_semaphore, #tpu.memory_space<semaphore_mem>>)
    %c1_i32 = arith.constant 1 : i32
    %2 = tpu.memref_slice %arg12[%c1_i32] : memref<2x!tpu.dma_semaphore, #tpu.memory_space<semaphore_mem>> -> memref<1x!tpu.dma_semaphore, #tpu.memory_space<semaphore_mem>>
    %3 = tpu.memref_squeeze %2 : memref<1x!tpu.dma_semaphore, #tpu.memory_space<semaphore_mem>> -> memref<!tpu.dma_semaphore, #tpu.memory_space<semaphore_mem>>
    tpu.enqueue_dma source(%arg5 : memref<256x128xbf16, #tpu.memory_space<any>>) target(%arg11 : memref<256x128xbf16, #tpu.memory_space<vmem>>) target_semaphore(%3 : memref<!tpu.dma_semaphore, #tpu.memory_space<semaphore_mem>>)
    %c0 = arith.constant 0 : index
    %c0_0 = arith.constant 0 : index
    %4 = vector.load %arg0[%c0, %c0_0] : memref<128x128xf32, #tpu.memory_space<vmem>>, vector<128x128xf32>
    %5 = arith.truncf %4 : vector<128x128xf32> to vector<128x128xbf16>
    %c0_1 = arith.constant 0 : index
    %c0_2 = arith.constant 0 : index
    %6 = vector.load %arg1[%c0_1, %c0_2] : memref<128x256xbf16, #tpu.memory_space<vmem>>, vector<128x256xbf16>
    %cst = arith.constant dense<0.000000e+00> : vector<128x256xf32>
    %7 = tpu.matmul %5, %6, %cst {dimension_numbers = #tpu.dot_dimension_numbers<[1], [0], [0], [1], [0, 0, 1, 1], [], []>} : vector<128x128xbf16>, vector<128x256xbf16>, vector<128x256xf32> -> vector<128x256xf32>
    %c0_3 = arith.constant 0 : index
    %c0_4 = arith.constant 0 : index
    %8 = vector.load %arg2[%c0_3, %c0_4] : memref<1x256xf32, #tpu.memory_space<vmem>>, vector<1x256xf32>
    %9 = vector.broadcast %8 : vector<1x256xf32> to vector<128x256xf32>
    %10 = arith.addf %7, %9 : vector<128x256xf32>
    %11 = arith.mulf %10, %10 : vector<128x256xf32>
    %12 = arith.mulf %10, %11 : vector<128x256xf32>
    %cst_5 = arith.constant 4.471500e-02 : f32
    %13 = vector.broadcast %cst_5 : f32 to vector<128x256xf32>
    %14 = arith.mulf %13, %12 : vector<128x256xf32>
    %15 = arith.addf %10, %14 : vector<128x256xf32>
    %cst_6 = arith.constant 0.797884583 : f32
    %16 = vector.broadcast %cst_6 : f32 to vector<128x256xf32>
    %17 = arith.mulf %16, %15 : vector<128x256xf32>
    %18 = math.tanh %17 : vector<128x256xf32>
    %cst_7 = arith.constant 1.000000e+00 : f32
    %19 = vector.broadcast %cst_7 : f32 to vector<128x256xf32>
    %20 = arith.addf %19, %18 : vector<128x256xf32>
    %cst_8 = arith.constant 5.000000e-01 : f32
    %21 = vector.broadcast %cst_8 : f32 to vector<128x256xf32>
    %22 = arith.mulf %21, %20 : vector<128x256xf32>
    %23 = arith.mulf %10, %22 : vector<128x256xf32>
    %c0_i32_9 = arith.constant 0 : i32
    %24 = tpu.memref_slice %arg12[%c0_i32_9] : memref<2x!tpu.dma_semaphore, #tpu.memory_space<semaphore_mem>> -> memref<1x!tpu.dma_semaphore, #tpu.memory_space<semaphore_mem>>
    %25 = tpu.memref_squeeze %24 : memref<1x!tpu.dma_semaphore, #tpu.memory_space<semaphore_mem>> -> memref<!tpu.dma_semaphore, #tpu.memory_space<semaphore_mem>>
    tpu.wait_dma2 semaphore(%25 : memref<!tpu.dma_semaphore, #tpu.memory_space<semaphore_mem>>) src(%arg3 : memref<256x256xbf16, #tpu.memory_space<any>>) dst(%arg10 : memref<256x256xbf16, #tpu.memory_space<vmem>>)
    %26 = arith.truncf %23 : vector<128x256xf32> to vector<128x256xbf16>
    %c0_10 = arith.constant 0 : index
    %c0_11 = arith.constant 0 : index
    %27 = vector.load %arg10[%c0_10, %c0_11] : memref<256x256xbf16, #tpu.memory_space<vmem>>, vector<256x256xbf16>
    %cst_12 = arith.constant dense<0.000000e+00> : vector<128x256xf32>
    %28 = tpu.matmul %26, %27, %cst_12 {dimension_numbers = #tpu.dot_dimension_numbers<[1], [0], [0], [1], [0, 0, 1, 1], [], []>} : vector<128x256xbf16>, vector<256x256xbf16>, vector<128x256xf32> -> vector<128x256xf32>
    %c0_13 = arith.constant 0 : index
    %c0_14 = arith.constant 0 : index
    %29 = vector.load %arg4[%c0_13, %c0_14] : memref<1x256xf32, #tpu.memory_space<vmem>>, vector<1x256xf32>
    %30 = vector.broadcast %29 : vector<1x256xf32> to vector<128x256xf32>
    %31 = arith.addf %28, %30 : vector<128x256xf32>
    %32 = arith.mulf %31, %31 : vector<128x256xf32>
    %33 = arith.mulf %31, %32 : vector<128x256xf32>
    %cst_15 = arith.constant 4.471500e-02 : f32
    %34 = vector.broadcast %cst_15 : f32 to vector<128x256xf32>
    %35 = arith.mulf %34, %33 : vector<128x256xf32>
    %36 = arith.addf %31, %35 : vector<128x256xf32>
    %cst_16 = arith.constant 0.797884583 : f32
    %37 = vector.broadcast %cst_16 : f32 to vector<128x256xf32>
    %38 = arith.mulf %37, %36 : vector<128x256xf32>
    %39 = math.tanh %38 : vector<128x256xf32>
    %cst_17 = arith.constant 1.000000e+00 : f32
    %40 = vector.broadcast %cst_17 : f32 to vector<128x256xf32>
    %41 = arith.addf %40, %39 : vector<128x256xf32>
    %cst_18 = arith.constant 5.000000e-01 : f32
    %42 = vector.broadcast %cst_18 : f32 to vector<128x256xf32>
    %43 = arith.mulf %42, %41 : vector<128x256xf32>
    %44 = arith.mulf %31, %43 : vector<128x256xf32>
    %45 = arith.truncf %44 : vector<128x256xf32> to vector<128x256xbf16>
    %c0_19 = arith.constant 0 : index
    %c0_20 = arith.constant 0 : index
    %46 = vector.load %arg8[%c0_19, %c0_20] : memref<128x256xbf16, #tpu.memory_space<vmem>>, vector<128x256xbf16>
    tpu.vector_store %arg8[%c0_19, %c0_20], %45 {strides = array<i32>} : memref<128x256xbf16, #tpu.memory_space<vmem>>, vector<128x256xbf16>,
    %c1_i32_21 = arith.constant 1 : i32
    %47 = tpu.memref_slice %arg12[%c1_i32_21] : memref<2x!tpu.dma_semaphore, #tpu.memory_space<semaphore_mem>> -> memref<1x!tpu.dma_semaphore, #tpu.memory_space<semaphore_mem>>
    %48 = tpu.memref_squeeze %47 : memref<1x!tpu.dma_semaphore, #tpu.memory_space<semaphore_mem>> -> memref<!tpu.dma_semaphore, #tpu.memory_space<semaphore_mem>>
    tpu.wait_dma2 semaphore(%48 : memref<!tpu.dma_semaphore, #tpu.memory_space<semaphore_mem>>) src(%arg5 : memref<256x128xbf16, #tpu.memory_space<any>>) dst(%arg11 : memref<256x128xbf16, #tpu.memory_space<vmem>>)
    %c0_22 = arith.constant 0 : index
    %c0_23 = arith.constant 0 : index
    %49 = vector.load %arg11[%c0_22, %c0_23] : memref<256x128xbf16, #tpu.memory_space<vmem>>, vector<256x128xbf16>
    %cst_24 = arith.constant dense<0.000000e+00> : vector<128x128xf32>
    %50 = tpu.matmul %45, %49, %cst_24 {dimension_numbers = #tpu.dot_dimension_numbers<[1], [0], [0], [1], [0, 0, 1, 1], [], []>} : vector<128x256xbf16>, vector<256x128xbf16>, vector<128x128xf32> -> vector<128x128xf32>
    %c0_25 = arith.constant 0 : index
    %c0_26 = arith.constant 0 : index
    %51 = vector.load %arg6[%c0_25, %c0_26] : memref<1x128xf32, #tpu.memory_space<vmem>>, vector<1x128xf32>
    %52 = vector.broadcast %51 : vector<1x128xf32> to vector<128x128xf32>
    %53 = arith.addf %50, %52 : vector<128x128xf32>
    %54 = tpu.iota {dimensions = array<i32: 1>} : vector<128x128xi32>
    %c5_i32 = arith.constant 5 : i32
    %55 = vector.broadcast %c5_i32 : i32 to vector<128x128xi32>
    %56 = arith.cmpi slt, %54, %55 : vector<128x128xi32>
    %cst_27 = arith.constant 0xFF800000 : f32
    %57 = vector.broadcast %cst_27 : f32 to vector<128x128xf32>
    %58 = arith.select %56, %53, %57 : vector<128x128xi1>, vector<128x128xf32>
    %cst_28 = arith.constant dense<0xFF800000> : vector<128xf32>
    %59 = vector.multi_reduction <maximumf>, %58, %cst_28 [1] : vector<128x128xf32> to vector<128xf32>
    %60 = vector.shape_cast %59 : vector<128xf32> to vector<128x1xf32>
    %61 = vector.broadcast %60 : vector<128x1xf32> to vector<128x128xf32>
    %62 = arith.subf %58, %61 : vector<128x128xf32>
    %63 = math.exp %62 : vector<128x128xf32>
    %cst_29 = arith.constant dense<0.000000e+00> : vector<128xf32>
    %64 = vector.multi_reduction <add>, %63, %cst_29 [1] : vector<128x128xf32> to vector<128xf32>
    %65 = vector.shape_cast %64 : vector<128xf32> to vector<128x1xf32>
    %66 = tpu.reciprocal %65 {approx = true} : vector<128x1xf32> -> vector<128x1xf32>
    %67 = vector.broadcast %66 : vector<128x1xf32> to vector<128x128xf32>
    %68 = arith.mulf %63, %67 : vector<128x128xf32>
    %69 = vector.extract_strided_slice %68 {offsets = [0, 0], sizes = [128, 5], strides = [1, 1]} : vector<128x128xf32> to vector<128x5xf32>
    %c0_30 = arith.constant 0 : index
    %c0_31 = arith.constant 0 : index
    %70 = vector.load %arg7[%c0_30, %c0_31] : memref<128x5xf32, #tpu.memory_space<vmem>>, vector<128x5xf32>
    tpu.vector_store %arg7[%c0_30, %c0_31], %69 {strides = array<i32>} : memref<128x5xf32, #tpu.memory_space<vmem>>, vector<128x5xf32>,
    %71 = vector.broadcast %60 : vector<128x1xf32> to vector<128x128xf32>
    %72 = arith.cmpf oeq, %58, %71 : vector<128x128xf32>
    %c128_i32 = arith.constant 128 : i32
    %73 = vector.broadcast %c128_i32 : i32 to vector<128x128xi32>
    %74 = arith.select %72, %54, %73 : vector<128x128xi1>, vector<128x128xi32>
    %cst_32 = arith.constant dense<2147483647> : vector<128xi32>
    %75 = vector.multi_reduction <minsi>, %74, %cst_32 [1] : vector<128x128xi32> to vector<128xi32>
    %76 = vector.shape_cast %75 : vector<128xi32> to vector<128x1xi32>
    %c0_33 = arith.constant 0 : index
    %c0_34 = arith.constant 0 : index
    %77 = vector.load %arg9[%c0_33, %c0_34] : memref<128x1xi32, #tpu.memory_space<vmem>>, vector<128x1xi32>
    tpu.vector_store %arg9[%c0_33, %c0_34], %76 {strides = array<i32>} : memref<128x1xi32, #tpu.memory_space<vmem>>, vector<128x1xi32>,
    return
  }
}

</mosaic_0001>

<bundles_post_ra>
// kernel: tpu_custom_call.1
= control target key start
LH: loop header
LB: loop body
LE: loop exit
PB: predicated region body
PF: predicated region fallthrough
CT: control target
= control target key end

     0   :  { %15 = vsyncpa [#allocation6], 0  ;;  %s3826_s0 = inlined_call_operand.hbm [shape: f32[128,128], index: 0, kind: input, shape index: {}]   ;;  %s3827_s1 = inlined_call_operand.hbm [shape: bf16[128,256], index: 1, kind: input, shape index: {}]   ;;  %s3828_s2 = inlined_call_operand.vmem [shape: f32[1,256], index: 2, kind: input, shape index: {}]   ;;  %s3829_s3 = inlined_call_operand.hbm [shape: bf16[256,256], index: 3, kind: input, shape index: {}]   ;;  %s3830_s4 = inlined_call_operand.vmem [shape: f32[1,256], index: 4, kind: input, shape index: {}]   ;;  %s3831_s5 = inlined_call_operand.hbm [shape: bf16[256,128], index: 5, kind: input, shape index: {}]   ;;  %s3832_s6 = inlined_call_operand.vmem [shape: f32[1,128], index: 6, kind: input, shape index: {}]   ;;  %s3833_s7 = inlined_call_operand.vmem [shape: f32[128,5], index: 7, kind: output, shape index: {0}]   ;;  %s3834_s8 = inlined_call_operand.hbm [shape: bf16[128,256], index: 8, kind: output, shape index: {1}]   ;;  %s3835_s9 = inlined_call_operand.vmem [shape: s32[128,1], index: 9, kind: output, shape index: {2}]  }
   0x1   :  { %16 = vsyncpa [#allocation9], 0 }
   0x2   :  { %17 = vsyncpa [#allocation7], 0  ;;  %s2288_s30 = smov [#allocation5]   ;;  %s2190_s13 = scalar_lea.hbm %s3826_s0, 2048 }
   0x3   :  { %s23_s10 = sshll.u32 %s2288_s30, 4  ;;  %p2191_p0 = scmp.ne.s32.totalorder %s3826_s0, %s2190_s13  ;;  %s24_s10 = int_to_ptr.vmem [resolvable:$true] %s23_s10 }
   0x4   :  { %p2194_p1 = scmp.lt.u32.totalorder %s2190_s13, %s3826_s0 }
   0x6   :  { %p2196_p2 = pnand %p2194_p1, %p2191_p0 }
   0x8   :  { %2199 = shalt.err (!%p2196_p2)
}
   0x9   :  { %s2200_s18 = scalar_lea.vmem %s24_s10, 2048  ;;  %p2205_p4 = scmp.lt.s32.totalorder %s24_s10, %s24_s10 }
   0xa   :  { %p2201_p3 = scmp.ne.s32.totalorder %s24_s10, %s2200_s18  ;;  %p2206_p5 = scmp.lt.s32.totalorder %s2200_s18, %s2200_s18 }
   0xc   :  { %p2207_p6 = por %p2206_p5, %p2205_p4 }
   0xe   :  { %p2208_p7 = pnand %p2207_p6, %p2201_p3 }
  0x10   :  { %2211 = shalt.err (!%p2208_p7)
}
  0x11   :  { %s2289_s19 = smov 128   ;;  %s2290_s20 = smov 8  }
  0x12   :  { %29 = dma.hbm_to_vmem [thread:$0]  %s3826_s0, 2048, %s24_s10, [#allocation6], %s2289_s19, %s2289_s19, %s2290_s20  }
  0x13   :  { %s2291_s23 = smov [#allocation8]   ;;  %s2212_s27 = scalar_lea.hbm %s3827_s1, 2048 }
  0x14   :  { %s35_s24 = sshll.u32 %s2291_s23, 4  ;;  %p2213_p8 = scmp.ne.s32.totalorder %s3827_s1, %s2212_s27  ;;  %s36_s24 = int_to_ptr.vmem [resolvable:$true] %s35_s24 }
  0x15   :  { %p2216_p9 = scmp.lt.u32.totalorder %s2212_s27, %s3827_s1 }
  0x17   :  { %p2218_p10 = pnand %p2216_p9, %p2213_p8 }
  0x19   :  { %2221 = shalt.err (!%p2218_p10)
}
  0x1a   :  { %s2222_s12 = scalar_lea.vmem %s36_s24, 2048  ;;  %p2227_p12 = scmp.lt.s32.totalorder %s36_s24, %s36_s24 }
  0x1b   :  { %p2223_p11 = scmp.ne.s32.totalorder %s36_s24, %s2222_s12  ;;  %p2228_p13 = scmp.lt.s32.totalorder %s2222_s12, %s2222_s12 }
  0x1d   :  { %p2229_p0 = por %p2228_p13, %p2227_p12 }
  0x1f   :  { %p2230_p1 = pnand %p2229_p0, %p2223_p11 }
  0x21   :  { %2233 = shalt.err (!%p2230_p1)
}
  0x22   :  { %41 = dma.hbm_to_vmem [thread:$0]  %s3827_s1, 2048, %s36_s24, [#allocation9], %s2289_s19, %s2289_s19, %s2290_s20  }
  0x23   :  { %2278 = dma.done.wait [#allocation6], 2048  }
  0x24   :  { %2279 = vsyncadd [#allocation6], 4294965248 }
  0x25   :  { %2280 = dma.done.wait [#allocation9], 2048  }
  0x26   :  { %2281 = vsyncadd [#allocation9], 4294965248  ;;  %s59_s13 = sld [smem:[#allocation0]]   ;;  %s2292_s14 = smov 256   ;;  %v2293_v0 = vmov 0  }
  0x27   :  { %71 = sst [smem:[#allocation12]] %s2292_s14  ;;  %266 = vmatprep.mubr.bf16.mxu0 %v2293_v0  ;;  %s2294_s15 = smov 2  }
  0x28   :  { %73 = sst [smem:[#allocation12 + $0x1]] %s2292_s14  ;;  %s2295_s16 = smov 64  }
  0x29   :  { %75 = sst [smem:[#allocation12 + $0x2]] %s2294_s15  ;;  %s2296_s17 = smov [#allocation2]  }
  0x2a   :  { %77 = sst [smem:[#allocation12 + $0x3]] %s2295_s16  ;;  %s67_s18 = sshll.u32 %s2296_s17, 4  ;;  %s68_s18 = int_to_ptr.vmem [resolvable:$true] %s67_s18 }
  0x2b   :  { %79 = sst [smem:[#allocation12 + $0x4]] %s2289_s19  ;;  %s2297_s22 = smov 4  }
  0x2c   :  { %81 = sst [smem:[#allocation12 + $0x5]] %s2294_s15  ;;  %s1827_s1 = sshll.u32 %s59_s13, 26 }
  0x2d   :  { %83 = sst [smem:[#allocation12 + $0x6]] %s2289_s19  ;;  %s1828_s21 = sadd.s32 134217728, %s1827_s1 }
  0x2e   :  { %85 = sst [smem:[#allocation12 + $0x7]] %s2295_s16  ;;  %s2298_s23 = smov [#allocation4]  }
  0x2f   :  { %87 = sst [smem:[#allocation12 + $0x8]] %s2297_s22  ;;  %s2299_s24 = smov [#allocation11]  }
  0x30   :  { %89 = dma.general %s3829_s3, 4096, %s68_s18, %s2298_s23, %s2299_s24, [#allocation12], %s1828_s21, 0  }
  0x31   :  { %v1974_v1 = vld [vmem:[#allocation8 + $0x4] ss:$8 sps:$4 sm:$0xff]   ;;  %v1976_v2 = vld [vmem:[#allocation8] ss:$8 sps:$4 sm:$0xff]   ;;  %v1977_v3 = vld [vmem:[#allocation8 + $0x14] ss:$8 sps:$4 sm:$0xff]  }
  0x32   :  { %234 = vmatprep.subr.bf16.mxu0 %v1974_v1  ;;  %v1979_v4 = vld [vmem:[#allocation8 + $0x10] ss:$8 sps:$4 sm:$0xff]   ;;  %v1980_v5 = vld [vmem:[#allocation8 + $0x24] ss:$8 sps:$4 sm:$0xff]   ;;  %v1982_v6 = vld [vmem:[#allocation8 + $0x20] ss:$8 sps:$4 sm:$0xff]  }
  0x33   :  { %235 = vmatpush1.bf16.msra.mxu0 %v1976_v2  ;;  %v1983_v7 = vld [vmem:[#allocation8 + $0x34] ss:$8 sps:$4 sm:$0xff]   ;;  %v1985_v8 = vld [vmem:[#allocation8 + $0x30] ss:$8 sps:$4 sm:$0xff]   ;;  %v1986_v9 = vld [vmem:[#allocation8 + $0x44] ss:$8 sps:$4 sm:$0xff]  }
  0x34   :  { %236 = vmatprep.subr.bf16.mxu0 %v1977_v3  ;;  %v1988_v10 = vld [vmem:[#allocation8 + $0x40] ss:$8 sps:$4 sm:$0xff]   ;;  %v1989_v11 = vld [vmem:[#allocation8 + $0x54] ss:$8 sps:$4 sm:$0xff]   ;;  %v1991_v12 = vld [vmem:[#allocation8 + $0x50] ss:$8 sps:$4 sm:$0xff]  }
  0x35   :  { %v1992_v13 = vld [vmem:[#allocation8 + $0x64] ss:$8 sps:$4 sm:$0xff]   ;;  %v1994_v14 = vld [vmem:[#allocation8 + $0x60] ss:$8 sps:$4 sm:$0xff]   ;;  %v1995_v15 = vld [vmem:[#allocation8 + $0x74] ss:$8 sps:$4 sm:$0xff]  }
  0x36   :  { %v1997_v16 = vld [vmem:[#allocation8 + $0x70] ss:$8 sps:$4 sm:$0xff]   ;;  %v102_v17 = vld [vmem:[#allocation5] sm:$0xff]  ;;  %v103_v18 = vld [vmem:[#allocation5 + $0x8] sm:$0xff]  ;;  %s2300_s3 = smov [#allocation3]   ;;  %s2234_s30 = scalar_lea.hbm %s3831_s5, 2048 }
  0x37   :  { %237 = vmatpush1.bf16.msra.mxu0 %v1979_v4  ;;  %v118_v19 = vpack.c.bf16 %v103_v18, %v102_v17  ;;  %v104_v20 = vld [vmem:[#allocation5 + $0x10] sm:$0xff]  ;;  %v105_v21 = vld [vmem:[#allocation5 + $0x18] sm:$0xff]  ;;  %v106_v23 = vld [vmem:[#allocation5 + $0x20] sm:$0xff]  ;;  %s98_s27 = sshll.u32 %s2300_s3, 4  ;;  %p2235_p2 = scmp.ne.s32.totalorder %s3831_s5, %s2234_s30  ;;  %s99_s27 = int_to_ptr.vmem [resolvable:$true] %s98_s27 }
  0x38   :  { %238 = vmatprep.subr.bf16.mxu0 %v1980_v5  ;;  %v119_v22 = vpack.c.bf16 %v105_v21, %v104_v20  ;;  %v107_v24 = vld [vmem:[#allocation5 + $0x28] sm:$0xff]  ;;  %v108_v26 = vld [vmem:[#allocation5 + $0x30] sm:$0xff]  ;;  %v109_v27 = vld [vmem:[#allocation5 + $0x38] sm:$0xff]  ;;  %p2238_p3 = scmp.lt.u32.totalorder %s2234_s30, %s3831_s5 }
  0x39   :  { %v120_v25 = vpack.c.bf16 %v107_v24, %v106_v23  ;;  %v121_v28 = vpack.c.bf16 %v109_v27, %v108_v26  ;;  %v110_v29 = vld [vmem:[#allocation5 + $0x40] sm:$0xff]  ;;  %v111_v30 = vld [vmem:[#allocation5 + $0x48] sm:$0xff]  ;;  %v112_v32 = vld [vmem:[#allocation5 + $0x50] sm:$0xff] }
  0x3a   :  { %v122_v31 = vpack.c.bf16 %v111_v30, %v110_v29  ;;  %v113_v33 = vld [vmem:[#allocation5 + $0x58] sm:$0xff]  ;;  %v114_v35 = vld [vmem:[#allocation5 + $0x60] sm:$0xff]  ;;  %v115_v36 = vld [vmem:[#allocation5 + $0x68] sm:$0xff]  ;;  %p2240_p4 = pnand %p2238_p3, %p2235_p2 }
  0x3b   :  { %239 = vmatpush1.bf16.msra.mxu0 %v1982_v6  ;;  %v123_v34 = vpack.c.bf16 %v113_v33, %v112_v32  ;;  %v124_v37 = vpack.c.bf16 %v115_v36, %v114_v35  ;;  %v116_v38 = vld [vmem:[#allocation5 + $0x70] sm:$0xff]  ;;  %v117_v39 = vld [vmem:[#allocation5 + $0x78] sm:$0xff] }
  0x3c   :  { %240 = vmatprep.subr.bf16.mxu0 %v1983_v7  ;;  %v125_v40 = vpack.c.bf16 %v117_v39, %v116_v38 }
  0x3f   :  { %241 = vmatpush1.bf16.msra.mxu0 %v1985_v8 }
  0x40   :  { %242 = vmatprep.subr.bf16.mxu0 %v1986_v9 }
  0x43   :  { %243 = vmatpush1.bf16.msra.mxu0 %v1988_v10 }
  0x44   :  { %244 = vmatprep.subr.bf16.mxu0 %v1989_v11 }
  0x47   :  { %245 = vmatpush1.bf16.msra.mxu0 %v1991_v12 }
  0x48   :  { %246 = vmatprep.subr.bf16.mxu0 %v1992_v13 }
  0x4b   :  { %247 = vmatpush1.bf16.msra.mxu0 %v1994_v14 }
  0x4c   :  { %248 = vmatprep.subr.bf16.mxu0 %v1995_v15 }
  0x4f   :  { %249 = vmatpush1.bf16.msra.mxu0 %v1997_v16 }
  0x52   :  { %267 = vmatmul.mubr.bf16.vlgmr.msra.gmra.mrb[0].mxu0 %v118_v19 }
  0x53   :  { %276 = vmatprep.mubr.bf16.mxu0 %v2293_v0 }
  0x5a   :  { %277 = vmatmul.mubr.bf16.gmra.mrb[4].mxu0 %v119_v22 }
  0x5b   :  { %286 = vmatprep.mubr.bf16.mxu0 %v2293_v0 }
  0x62   :  { %287 = vmatmul.mubr.bf16.gmra.mrb[8].mxu0 %v120_v25 }
  0x63   :  { %296 = vmatprep.mubr.bf16.mxu0 %v2293_v0 }
  0x6a   :  { %297 = vmatmul.mubr.bf16.gmra.mrb[12].mxu0 %v121_v28 }
  0x6b   :  { %306 = vmatprep.mubr.bf16.mxu0 %v2293_v0 }
  0x72   :  { %307 = vmatmul.mubr.bf16.gmra.mrb[16].mxu0 %v122_v31 }
  0x73   :  { %316 = vmatprep.mubr.bf16.mxu0 %v2293_v0 }
  0x7a   :  { %317 = vmatmul.mubr.bf16.gmra.mrb[20].mxu0 %v123_v34 }
  0x7b   :  { %326 = vmatprep.mubr.bf16.mxu0 %v2293_v0 }
  0x82   :  { %327 = vmatmul.mubr.bf16.gmra.mrb[24].mxu0 %v124_v37 }
  0x83   :  { %336 = vmatprep.mubr.bf16.mxu0 %v2293_v0 }
  0x8a   :  { %337 = vmatmul.mubr.bf16.gmra.mrb[28].mxu0 %v125_v40 }
  0x8b   :  { %2243 = shalt.err (!%p2240_p4)  }
  0x8c   :  { %s2244_s13 = scalar_lea.vmem %s99_s27, 2048  ;;  %p2249_p6 = scmp.lt.s32.totalorder %s99_s27, %s99_s27 }
  0x8d   :  { %p2245_p5 = scmp.ne.s32.totalorder %s99_s27, %s2244_s13  ;;  %p2250_p7 = scmp.lt.s32.totalorder %s2244_s13, %s2244_s13 }
  0x8f   :  { %p2251_p8 = por %p2250_p7, %p2249_p6 }
  0x91   :  { %p2252_p9 = pnand %p2251_p8, %p2245_p5 }
  0x93   :  { %2255 = shalt.err (!%p2252_p9)  }
  0x94   :  { %101 = dma.hbm_to_vmem [thread:$0]  %s3831_s5, 2048, %s99_s27, [#allocation4 + $0x1]  ;;  %v3836_v41 = vlaneseq  ;;  %v142_v44 = vld [vmem:[%s3828_s2] sm:$0x3] }
  0x96   :  { %v2408_v42 = vshrl.u32 %v3836_v41, 7 }
  0x98   :  { %v146_v43 = vsub.s32 0, %v2408_v42  ;;  %v150_v45 = vsub.s32 1, %v2408_v42 }
  0x9a   :  { %v2417_v46 = vrot.slane %v142_v44, %v146_v43  ;;  %v2421_v47 = vrot.slane %v142_v44, %v150_v45 }
 0x125   :  { %v268_v48 = vpop.f32.mrb[0].mxu0 }
 0x126   :  { %v2424_v49 = vadd.f32 %v268_v48, %v2417_v46  ;;  %v270_v50 = vpop.f32.mrb[1].mxu0 }
 0x127   :  { %v2427_v51 = vadd.f32 %v270_v50, %v2421_v47  ;;  %v272_v52 = vpop.f32.mrb[2].mxu0 }
 0x128   :  { %v347_v53 = vmul.f32 %v2424_v49, %v2424_v49  ;;  %v2432_v54 = vadd.f32 %v272_v52, %v2417_v46  ;;  %v274_v55 = vpop.f32.mrb[3].mxu0 }
 0x129   :  { %v348_v56 = vmul.f32 %v2427_v51, %v2427_v51  ;;  %v2437_v57 = vadd.f32 %v274_v55, %v2421_v47 }
 0x12a   :  { %v379_v58 = vmul.f32 %v347_v53, %v2424_v49  ;;  %v349_v59 = vmul.f32 %v2432_v54, %v2432_v54 }
 0x12b   :  { %v380_v60 = vmul.f32 %v348_v56, %v2427_v51  ;;  %v350_v61 = vmul.f32 %v2437_v57, %v2437_v57 }
 0x12c   :  { %v411_v62 = vmul.f32 0.044715, %v379_v58  ;;  %v381_v63 = vmul.f32 %v349_v59, %v2432_v54 }
 0x12d   :  { %v412_v0 = vmul.f32 0.044715, %v380_v60  ;;  %v382_v1 = vmul.f32 %v350_v61, %v2437_v57  ;;  %v278_v2 = vpop.f32.mrb[4].mxu0 }
 0x12e   :  { %v443_v3 = vadd.f32 %v411_v62, %v2424_v49  ;;  %v413_v4 = vmul.f32 0.044715, %v381_v63  ;;  %v2449_v5 = vadd.f32 %v278_v2, %v2417_v46  ;;  %v280_v6 = vpop.f32.mrb[5].mxu0 }
 0x12f   :  { %v444_v7 = vadd.f32 %v412_v0, %v2427_v51  ;;  %v414_v8 = vmul.f32 0.044715, %v382_v1  ;;  %v2453_v9 = vadd.f32 %v280_v6, %v2421_v47  ;;  %v282_v10 = vpop.f32.mrb[6].mxu0 }
 0x130   :  { %v475_v11 = vmul.f32 0.7978846, %v443_v3  ;;  %v445_v12 = vadd.f32 %v413_v4, %v2432_v54  ;;  %v351_v13 = vmul.f32 %v2449_v5, %v2449_v5  ;;  %v2459_v14 = vadd.f32 %v282_v10, %v2417_v46  ;;  %v284_v15 = vpop.f32.mrb[7].mxu0 }
 0x131   :  { %v476_v16 = vmul.f32 0.7978846, %v444_v7  ;;  %v446_v17 = vadd.f32 %v414_v8, %v2437_v57  ;;  %v352_v18 = vmul.f32 %v2453_v9, %v2453_v9  ;;  %v2465_v19 = vadd.f32 %v284_v15, %v2421_v47 }
 0x132   :  { %1998 = vtanh.f32 %v475_v11  ;;  %v477_v20 = vmul.f32 0.7978846, %v445_v12  ;;  %v383_v21 = vmul.f32 %v351_v13, %v2449_v5  ;;  %v353_v22 = vmul.f32 %v2459_v14, %v2459_v14 }
 0x133   :  { %2000 = vtanh.f32 %v476_v16  ;;  %v478_v23 = vmul.f32 0.7978846, %v446_v17  ;;  %v384_v24 = vmul.f32 %v352_v18, %v2453_v9  ;;  %v354_v25 = vmul.f32 %v2465_v19, %v2465_v19 }
 0x134   :  { %2002 = vtanh.f32 %v477_v20  ;;  %v415_v26 = vmul.f32 0.044715, %v383_v21  ;;  %v385_v27 = vmul.f32 %v353_v22, %v2459_v14 }
 0x135   :  { %2004 = vtanh.f32 %v478_v23  ;;  %v416_v28 = vmul.f32 0.044715, %v384_v24  ;;  %v386_v29 = vmul.f32 %v354_v25, %v2465_v19  ;;  %v288_v30 = vpop.f32.mrb[8].mxu0 }
 0x136   :  { %v447_v31 = vadd.f32 %v415_v26, %v2449_v5  ;;  %v417_v32 = vmul.f32 0.044715, %v385_v27  ;;  %v2477_v33 = vadd.f32 %v288_v30, %v2417_v46  ;;  %v290_v34 = vpop.f32.mrb[9].mxu0 }
 0x137   :  { %v448_v35 = vadd.f32 %v416_v28, %v2453_v9  ;;  %v418_v36 = vmul.f32 0.044715, %v386_v29  ;;  %v2481_v37 = vadd.f32 %v290_v34, %v2421_v47  ;;  %v292_v38 = vpop.f32.mrb[10].mxu0 }
 0x138   :  { %v479_v39 = vmul.f32 0.7978846, %v447_v31  ;;  %v449_v40 = vadd.f32 %v417_v32, %v2459_v14  ;;  %v355_v44 = vmul.f32 %v2477_v33, %v2477_v33  ;;  %v2487_v48 = vadd.f32 %v292_v38, %v2417_v46  ;;  %v294_v50 = vpop.f32.mrb[11].mxu0 }
 0x139   :  { %v480_v52 = vmul.f32 0.7978846, %v448_v35  ;;  %v450_v53 = vadd.f32 %v418_v36, %v2465_v19  ;;  %v356_v55 = vmul.f32 %v2481_v37, %v2481_v37  ;;  %v2493_v56 = vadd.f32 %v294_v50, %v2421_v47 }
 0x13a   :  { %2006 = vtanh.f32 %v479_v39  ;;  %v481_v58 = vmul.f32 0.7978846, %v449_v40  ;;  %v387_v59 = vmul.f32 %v355_v44, %v2477_v33  ;;  %v357_v60 = vmul.f32 %v2487_v48, %v2487_v48 }
 0x13b   :  { %2008 = vtanh.f32 %v480_v52  ;;  %v482_v61 = vmul.f32 0.7978846, %v450_v53  ;;  %v388_v62 = vmul.f32 %v356_v55, %v2481_v37  ;;  %v358_v63 = vmul.f32 %v2493_v56, %v2493_v56 }
 0x13c   :  { %v1999_v0 = vpop.eup %1998  ;;  %2010 = vtanh.f32 %v481_v58  ;;  %v419_v1 = vmul.f32 0.044715, %v387_v59  ;;  %v389_v2 = vmul.f32 %v357_v60, %v2487_v48 }
 0x13d   :  { %v2001_v3 = vpop.eup %2000  ;;  %v539_v4 = vadd.f32 1.0, %v1999_v0  ;;  %2012 = vtanh.f32 %v482_v61  ;;  %v420_v6 = vmul.f32 0.044715, %v388_v62  ;;  %v390_v7 = vmul.f32 %v358_v63, %v2493_v56  ;;  %v298_v8 = vpop.f32.mrb[12].mxu0 }
 0x13e   :  { %v2003_v10 = vpop.eup %2002  ;;  %v540_v11 = vadd.f32 1.0, %v2001_v3  ;;  %v451_v12 = vadd.f32 %v419_v1, %v2477_v33  ;;  %v421_v13 = vmul.f32 0.044715, %v389_v2  ;;  %v2505_v15 = vadd.f32 %v298_v8, %v2417_v46  ;;  %v300_v16 = vpop.f32.mrb[13].mxu0 }
 0x13f   :  { %v2005_v17 = vpop.eup %2004  ;;  %v571_v18 = vmul.f32 0.5, %v539_v4  ;;  %v541_v20 = vadd.f32 1.0, %v2003_v10  ;;  %v452_v21 = vadd.f32 %v420_v6, %v2481_v37  ;;  %v422_v22 = vmul.f32 0.044715, %v390_v7  ;;  %v302_v23 = vpop.f32.mrb[14].mxu0 }
 0x140   :  { %v572_v24 = vmul.f32 0.5, %v540_v11  ;;  %v542_v25 = vadd.f32 1.0, %v2005_v17  ;;  %v483_v26 = vmul.f32 0.7978846, %v451_v12  ;;  %v453_v27 = vadd.f32 %v421_v13, %v2487_v48  ;;  %v304_v28 = vpop.f32.mrb[15].mxu0 }
 0x141   :  { %v2510_v29 = vmul.f32 %v571_v18, %v2424_v49  ;;  %v573_v30 = vmul.f32 0.5, %v541_v20  ;;  %v484_v31 = vmul.f32 0.7978846, %v452_v21  ;;  %v454_v32 = vadd.f32 %v422_v22, %v2493_v56 }
 0x142   :  { %v2514_v34 = vmul.f32 %v572_v24, %v2427_v51  ;;  %v574_v35 = vmul.f32 0.5, %v542_v25  ;;  %2014 = vtanh.f32 %v483_v26  ;;  %v485_v36 = vmul.f32 0.7978846, %v453_v27 }
 0x143   :  { %v2517_v38 = vmul.f32 %v573_v30, %v2432_v54  ;;  %2016 = vtanh.f32 %v484_v31  ;;  %v486_v39 = vmul.f32 0.7978846, %v454_v32  ;;  %v359_v40 = vmul.f32 %v2505_v15, %v2505_v15 }
 0x144   :  { %v2007_v49 = vpop.eup %2006  ;;  %v2522_v44 = vmul.f32 %v574_v35, %v2437_v57  ;;  %2018 = vtanh.f32 %v485_v36  ;;  %v2525_v50 = vadd.f32 %v300_v16, %v2421_v47  ;;  %v2528_v51 = vadd.f32 %v302_v23, %v2417_v46 }
 0x145   :  { %v2009_v52 = vpop.eup %2008  ;;  %v543_v53 = vadd.f32 1.0, %v2007_v49  ;;  %2020 = vtanh.f32 %v486_v39  ;;  %v391_v54 = vmul.f32 %v359_v40, %v2505_v15  ;;  %v2532_v55 = vadd.f32 %v304_v28, %v2421_v47  ;;  %v308_v58 = vpop.f32.mrb[16].mxu0 }
 0x146   :  { %v2011_v59 = vpop.eup %2010  ;;  %v544_v60 = vadd.f32 1.0, %v2009_v52  ;;  %v360_v57 = vmul.f32 %v2525_v50, %v2525_v50  ;;  %v361_v61 = vmul.f32 %v2528_v51, %v2528_v51  ;;  %v2539_v62 = vadd.f32 %v308_v58, %v2417_v46  ;;  %v310_v63 = vpop.f32.mrb[17].mxu0 }
 0x147   :  { %v2013_v0 = vpop.eup %2012  ;;  %v575_v1 = vmul.f32 0.5, %v543_v53  ;;  %v545_v2 = vadd.f32 1.0, %v2011_v59  ;;  %v423_v3 = vmul.f32 0.044715, %v391_v54  ;;  %v362_v4 = vmul.f32 %v2532_v55, %v2532_v55  ;;  %v312_v6 = vpop.f32.mrb[18].mxu0 }
 0x148   :  { %v576_v7 = vmul.f32 0.5, %v544_v60  ;;  %v546_v8 = vadd.f32 1.0, %v2013_v0  ;;  %v392_v10 = vmul.f32 %v360_v57, %v2525_v50  ;;  %v393_v11 = vmul.f32 %v361_v61, %v2528_v51  ;;  %v314_v12 = vpop.f32.mrb[19].mxu0 }
 0x149   :  { %v2546_v13 = vmul.f32 %v575_v1, %v2449_v5  ;;  %v577_v16 = vmul.f32 0.5, %v545_v2  ;;  %v455_v17 = vadd.f32 %v423_v3, %v2505_v15  ;;  %v394_v18 = vmul.f32 %v362_v4, %v2532_v55 }
 0x14a   :  { %v2551_v20 = vmul.f32 %v576_v7, %v2453_v9  ;;  %v578_v21 = vmul.f32 0.5, %v546_v8  ;;  %v424_v22 = vmul.f32 0.044715, %v392_v10  ;;  %v425_v23 = vmul.f32 0.044715, %v393_v11 }
 0x14b   :  { %v2554_v24 = vmul.f32 %v577_v16, %v2459_v14  ;;  %v487_v25 = vmul.f32 0.7978846, %v455_v17  ;;  %v426_v26 = vmul.f32 0.044715, %v394_v18  ;;  %v363_v5 = vmul.f32 %v2539_v62, %v2539_v62 }
 0x14c   :  { %v2015_v27 = vpop.eup %2014  ;;  %v2559_v28 = vmul.f32 %v578_v21, %v2465_v19  ;;  %v456_v30 = vadd.f32 %v424_v22, %v2525_v50  ;;  %v457_v9 = vadd.f32 %v425_v23, %v2528_v51  ;;  %v2564_v31 = vadd.f32 %v310_v63, %v2421_v47 }
 0x14d   :  { %v2017_v32 = vpop.eup %2016  ;;  %v547_v35 = vadd.f32 1.0, %v2015_v27  ;;  %2022 = vtanh.f32 %v487_v25  ;;  %v458_v14 = vadd.f32 %v426_v26, %v2532_v55  ;;  %v395_v36 = vmul.f32 %v363_v5, %v2539_v62  ;;  %v318_v39 = vpop.f32.mrb[20].mxu0 }
 0x14e   :  { %v2019_v40 = vpop.eup %2018  ;;  %v548_v49 = vadd.f32 1.0, %v2017_v32  ;;  %v488_v52 = vmul.f32 0.7978846, %v456_v30  ;;  %v489_v19 = vmul.f32 0.7978846, %v457_v9  ;;  %v364_v53 = vmul.f32 %v2564_v31, %v2564_v31  ;;  %v320_v54 = vpop.f32.mrb[21].mxu0 }
 0x14f   :  { %v2021_v58 = vpop.eup %2020  ;;  %v579_v59 = vmul.f32 0.5, %v547_v35  ;;  %v549_v60 = vadd.f32 1.0, %v2019_v40  ;;  %v490_v57 = vmul.f32 0.7978846, %v458_v14  ;;  %v427_v61 = vmul.f32 0.044715, %v395_v36 }
 0x150   :  { %v580_v63 = vmul.f32 0.5, %v548_v49  ;;  %v550_v0 = vadd.f32 1.0, %v2021_v58  ;;  %2024 = vtanh.f32 %v488_v52  ;;  %v396_v1 = vmul.f32 %v364_v53, %v2564_v31  ;;  %v322_v2 = vpop.f32.mrb[22].mxu0 }
 0x151   :  { %v2572_v3 = vmul.f32 %v579_v59, %v2477_v33  ;;  %v581_v4 = vmul.f32 0.5, %v549_v60  ;;  %2026 = vtanh.f32 %v489_v19  ;;  %v459_v7 = vadd.f32 %v427_v61, %v2539_v62  ;;  %v324_v8 = vpop.f32.mrb[23].mxu0 }
 0x152   :  { %v2576_v10 = vmul.f32 %v580_v63, %v2481_v37  ;;  %v582_v11 = vmul.f32 0.5, %v550_v0  ;;  %2028 = vtanh.f32 %v490_v57  ;;  %v428_v16 = vmul.f32 0.044715, %v396_v1 }
 0x153   :  { %v2579_v17 = vmul.f32 %v581_v4, %v2487_v48  ;;  %v491_v18 = vmul.f32 0.7978846, %v459_v7  ;;  %v2582_v21 = vadd.f32 %v312_v6, %v2417_v46  ;;  %v2585_v33 = vadd.f32 %v314_v12, %v2421_v47 }
 0x154   :  { %v2588_v22 = vmul.f32 %v582_v11, %v2493_v56  ;;  %v460_v23 = vadd.f32 %v428_v16, %v2564_v31  ;;  %v2592_v37 = vadd.f32 %v318_v39, %v2417_v46  ;;  %v2595_v25 = vadd.f32 %v320_v54, %v2421_v47 }
 0x155   :  { %2030 = vtanh.f32 %v491_v18  ;;  %v365_v48 = vmul.f32 %v2582_v21, %v2582_v21  ;;  %v366_v6 = vmul.f32 %v2585_v33, %v2585_v33  ;;  %v2602_v12 = vadd.f32 %v322_v2, %v2417_v46  ;;  %v328_v56 = vpop.f32.mrb[24].mxu0 }
 0x156   :  { %v492_v26 = vmul.f32 0.7978846, %v460_v23  ;;  %v367_v5 = vmul.f32 %v2592_v37, %v2592_v37  ;;  %v368_v27 = vmul.f32 %v2595_v25, %v2595_v25  ;;  %v2609_v30 = vadd.f32 %v324_v8, %v2421_v47  ;;  %v330_v9 = vpop.f32.mrb[25].mxu0 }
 0x157   :  { %v2023_v32 = vpop.eup %2022  ;;  %v397_v35 = vmul.f32 %v365_v48, %v2582_v21  ;;  %v398_v14 = vmul.f32 %v366_v6, %v2585_v33  ;;  %v369_v36 = vmul.f32 %v2602_v12, %v2602_v12  ;;  %v2616_v39 = vadd.f32 %v328_v56, %v2417_v46  ;;  %v332_v40 = vpop.f32.mrb[26].mxu0 }
 0x158   :  { %v551_v49 = vadd.f32 1.0, %v2023_v32  ;;  %2032 = vtanh.f32 %v492_v26  ;;  %v399_v52 = vmul.f32 %v367_v5, %v2592_v37  ;;  %v400_v19 = vmul.f32 %v368_v27, %v2595_v25  ;;  %v334_v53 = vpop.f32.mrb[27].mxu0 }
 0x159   :  { %v429_v54 = vmul.f32 0.044715, %v397_v35  ;;  %v430_v58 = vmul.f32 0.044715, %v398_v14  ;;  %v401_v59 = vmul.f32 %v369_v36, %v2602_v12  ;;  %v370_v60 = vmul.f32 %v2609_v30, %v2609_v30 }
 0x15a   :  { %v2025_v57 = vpop.eup %2024  ;;  %v583_v61 = vmul.f32 0.5, %v551_v49  ;;  %v431_v63 = vmul.f32 0.044715, %v399_v52  ;;  %v432_v0 = vmul.f32 0.044715, %v400_v19  ;;  %v371_v1 = vmul.f32 %v2616_v39, %v2616_v39 }
 0x15b   :  { %v2027_v2 = vpop.eup %2026  ;;  %v552_v4 = vadd.f32 1.0, %v2025_v57  ;;  %v461_v7 = vadd.f32 %v429_v54, %v2582_v21  ;;  %v462_v8 = vadd.f32 %v430_v58, %v2585_v33  ;;  %v433_v11 = vmul.f32 0.044715, %v401_v59 }
 0x15c   :  { %v2029_v16 = vpop.eup %2028  ;;  %v2628_v18 = vmul.f32 %v583_v61, %v2505_v15  ;;  %v553_v23 = vadd.f32 1.0, %v2027_v2  ;;  %v463_v48 = vadd.f32 %v431_v63, %v2592_v37  ;;  %v464_v6 = vadd.f32 %v432_v0, %v2595_v25 }
 0x15d   :  { %v584_v56 = vmul.f32 0.5, %v552_v4  ;;  %v554_v26 = vadd.f32 1.0, %v2029_v16  ;;  %v493_v5 = vmul.f32 0.7978846, %v461_v7  ;;  %v494_v27 = vmul.f32 0.7978846, %v462_v8 }
 0x15e   :  { %v585_v32 = vmul.f32 0.5, %v553_v23  ;;  %v495_v35 = vmul.f32 0.7978846, %v463_v48  ;;  %v496_v14 = vmul.f32 0.7978846, %v464_v6  ;;  %v465_v36 = vadd.f32 %v433_v11, %v2602_v12  ;;  %v338_v49 = vpop.f32.mrb[28].mxu0 }
 0x15f   :  { %v2031_v52 = vpop.eup %2030  ;;  %v2634_v19 = vmul.f32 %v584_v56, %v2525_v50  ;;  %v586_v15 = vmul.f32 0.5, %v554_v26  ;;  %2034 = vtanh.f32 %v493_v5  ;;  %v402_v54 = vmul.f32 %v370_v60, %v2609_v30  ;;  %v340_v58 = vpop.f32.mrb[29].mxu0 }
 0x160   :  { %v2638_v59 = vmul.f32 %v585_v32, %v2528_v51  ;;  %v555_v57 = vadd.f32 1.0, %v2031_v52  ;;  %2036 = vtanh.f32 %v494_v27  ;;  %v497_v61 = vmul.f32 0.7978846, %v465_v36  ;;  %v342_v63 = vpop.f32.mrb[30].mxu0 }
 0x161   :  { %v2641_v0 = vmul.f32 %v586_v15, %v2532_v55  ;;  %2038 = vtanh.f32 %v495_v35  ;;  %v434_v2 = vmul.f32 0.044715, %v402_v54  ;;  %v403_v50 = vmul.f32 %v371_v1, %v2616_v39  ;;  %v344_v4 = vpop.f32.mrb[31].mxu0 }
 0x162   :  { %v2033_v7 = vpop.eup %2032  ;;  %v587_v8 = vmul.f32 0.5, %v555_v57  ;;  %2040 = vtanh.f32 %v496_v14  ;;  %v2645_v60 = vadd.f32 %v330_v9, %v2421_v47  ;;  %v2648_v51 = vadd.f32 %v332_v40, %v2417_v46 }
 0x163   :  { %v556_v11 = vadd.f32 1.0, %v2033_v7  ;;  %2042 = vtanh.f32 %v497_v61  ;;  %v466_v16 = vadd.f32 %v434_v2, %v2609_v30  ;;  %v435_v55 = vmul.f32 0.044715, %v403_v50 }
 0x164   :  { %v2652_v23 = vmul.f32 %v587_v8, %v2539_v62  ;;  %v372_v1 = vmul.f32 %v2645_v60, %v2645_v60  ;;  %v373_v48 = vmul.f32 %v2648_v51, %v2648_v51  ;;  %v2659_v9 = vadd.f32 %v334_v53, %v2421_v47 }
 0x165   :  { %v588_v6 = vmul.f32 0.5, %v556_v11  ;;  %v498_v40 = vmul.f32 0.7978846, %v466_v16  ;;  %v467_v56 = vadd.f32 %v435_v55, %v2616_v39  ;;  %v2663_v26 = vadd.f32 %v338_v49, %v2417_v46 }
 0x166   :  { %v404_v5 = vmul.f32 %v372_v1, %v2645_v60  ;;  %v405_v62 = vmul.f32 %v373_v48, %v2648_v51  ;;  %v374_v27 = vmul.f32 %v2659_v9, %v2659_v9  ;;  %v2670_v32 = vadd.f32 %v340_v58, %v2421_v47 }
 0x167   :  { %v2673_v53 = vmul.f32 %v588_v6, %v2564_v31  ;;  %2044 = vtanh.f32 %v498_v40  ;;  %v499_v35 = vmul.f32 0.7978846, %v467_v56  ;;  %v375_v14 = vmul.f32 %v2663_v26, %v2663_v26 }
 0x168   :  { %v436_v36 = vmul.f32 0.044715, %v404_v5  ;;  %v437_v49 = vmul.f32 0.044715, %v405_v62  ;;  %v406_v52 = vmul.f32 %v374_v27, %v2659_v9  ;;  %v376_v15 = vmul.f32 %v2670_v32, %v2670_v32 }
 0x169   :  { %v2035_v54 = vpop.eup %2034  ;;  %2046 = vtanh.f32 %v499_v35  ;;  %v407_v58 = vmul.f32 %v375_v14, %v2663_v26  ;;  %v2682_v57 = vadd.f32 %v342_v63, %v2417_v46  ;;  %v2685_v31 = vadd.f32 %v344_v4, %v2421_v47 }
 0x16a   :  { %v2037_v61 = vpop.eup %2036  ;;  %v557_v2 = vadd.f32 1.0, %v2035_v54  ;;  %v468_v50 = vadd.f32 %v436_v36, %v2645_v60  ;;  %v469_v7 = vadd.f32 %v437_v49, %v2648_v51  ;;  %v438_v8 = vmul.f32 0.044715, %v406_v52 }
 0x16b   :  { %v2039_v11 = vpop.eup %2038  ;;  %v558_v16 = vadd.f32 1.0, %v2037_v61  ;;  %v439_v55 = vmul.f32 0.044715, %v407_v58  ;;  %v408_v1 = vmul.f32 %v376_v15, %v2670_v32  ;;  %v377_v48 = vmul.f32 %v2682_v57, %v2682_v57 }
 0x16c   :  { %v2041_v46 = vpop.eup %2040  ;;  %v589_v63 = vmul.f32 0.5, %v557_v2  ;;  %v559_v6 = vadd.f32 1.0, %v2039_v11  ;;  %v500_v47 = vmul.f32 0.7978846, %v468_v50  ;;  %v501_v4 = vmul.f32 0.7978846, %v469_v7 }
 0x16d   :  { %v2043_v40 = vpop.eup %2042  ;;  %v590_v56 = vmul.f32 0.5, %v558_v16  ;;  %v560_v5 = vadd.f32 1.0, %v2041_v46  ;;  %v470_v62 = vadd.f32 %v438_v8, %v2659_v9  ;;  %v471_v27 = vadd.f32 %v439_v55, %v2663_v26 }
 0x16e   :  { %v2695_v35 = vmul.f32 %v589_v63, %v2582_v21  ;;  %v591_v14 = vmul.f32 0.5, %v559_v6  ;;  %v561_v36 = vadd.f32 1.0, %v2043_v40  ;;  %2048 = vtanh.f32 %v500_v47 }
 0x16f   :  { %v2698_v49 = vmul.f32 %v590_v56, %v2585_v33  ;;  %v592_v52 = vmul.f32 0.5, %v560_v5  ;;  %2050 = vtanh.f32 %v501_v4  ;;  %v502_v15 = vmul.f32 0.7978846, %v470_v62 }
 0x170   :  { %v2701_v54 = vmul.f32 %v591_v14, %v2592_v37  ;;  %v593_v58 = vmul.f32 0.5, %v561_v36  ;;  %v503_v61 = vmul.f32 0.7978846, %v471_v27  ;;  %v440_v2 = vmul.f32 0.044715, %v408_v1 }
 0x171   :  { %v2045_v50 = vpop.eup %2044  ;;  %v2704_v7 = vmul.f32 %v592_v52, %v2595_v25  ;;  %2052 = vtanh.f32 %v502_v15  ;;  %v409_v21 = vmul.f32 %v377_v48, %v2682_v57  ;;  %v378_v33 = vmul.f32 %v2685_v31, %v2685_v31 }
 0x172   :  { %v2710_v8 = vmul.f32 %v593_v58, %v2602_v12  ;;  %v562_v11 = vadd.f32 1.0, %v2045_v50  ;;  %2054 = vtanh.f32 %v503_v61  ;;  %v472_v37 = vadd.f32 %v440_v2, %v2670_v32 }
 0x173   :  { %v2047_v16 = vpop.eup %2046  ;;  %v441_v55 = vmul.f32 0.044715, %v409_v21  ;;  %v410_v1 = vmul.f32 %v378_v33, %v2685_v31 }
 0x174   :  { %v594_v46 = vmul.f32 0.5, %v562_v11  ;;  %v563_v25 = vadd.f32 1.0, %v2047_v16  ;;  %v504_v63 = vmul.f32 0.7978846, %v472_v37 }
 0x175   :  { %v473_v6 = vadd.f32 %v441_v55, %v2682_v57  ;;  %v442_v48 = vmul.f32 0.044715, %v410_v1 }
 0x176   :  { %v2716_v47 = vmul.f32 %v594_v46, %v2609_v30  ;;  %v595_v4 = vmul.f32 0.5, %v563_v25  ;;  %2056 = vtanh.f32 %v504_v63 }
 0x177   :  { %v505_v12 = vmul.f32 0.7978846, %v473_v6  ;;  %v474_v40 = vadd.f32 %v442_v48, %v2685_v31 }
 0x178   :  { %v2049_v56 = vpop.eup %2048  ;;  %v2720_v5 = vmul.f32 %v595_v4, %v2616_v39 }
 0x179   :  { %v2051_v62 = vpop.eup %2050  ;;  %v564_v27 = vadd.f32 1.0, %v2049_v56  ;;  %2058 = vtanh.f32 %v505_v12  ;;  %v506_v14 = vmul.f32 0.7978846, %v474_v40 }
 0x17a   :  { %v565_v36 = vadd.f32 1.0, %v2051_v62 }
 0x17b   :  { %v2053_v52 = vpop.eup %2052  ;;  %v596_v15 = vmul.f32 0.5, %v564_v27  ;;  %2060 = vtanh.f32 %v506_v14 }
 0x17c   :  { %v2055_v58 = vpop.eup %2054  ;;  %v597_v30 = vmul.f32 0.5, %v565_v36  ;;  %v566_v61 = vadd.f32 1.0, %v2053_v52 }
 0x17d   :  { %v2723_v2 = vmul.f32 %v596_v15, %v2645_v60  ;;  %v567_v50 = vadd.f32 1.0, %v2055_v58 }
 0x17e   :  { %v2726_v21 = vmul.f32 %v597_v30, %v2648_v51  ;;  %v598_v39 = vmul.f32 0.5, %v566_v61 }
 0x17f   :  { %v599_v33 = vmul.f32 0.5, %v567_v50 }
 0x180   :  { %v2057_v11 = vpop.eup %2056  ;;  %v2729_v37 = vmul.f32 %v598_v39, %v2659_v9 }
 0x181   :  { %v2732_v16 = vmul.f32 %v599_v33, %v2663_v26  ;;  %v568_v55 = vadd.f32 1.0, %v2057_v11 }
 0x183   :  { %v2059_v1 = vpop.eup %2058  ;;  %v600_v46 = vmul.f32 0.5, %v568_v55 }
 0x184   :  { %v569_v25 = vadd.f32 1.0, %v2059_v1 }
 0x185   :  { %v2061_v63 = vpop.eup %2060  ;;  %v2735_v60 = vmul.f32 %v600_v46, %v2670_v32 }
 0x186   :  { %v601_v6 = vmul.f32 0.5, %v569_v25  ;;  %v570_v51 = vadd.f32 1.0, %v2061_v63 }
 0x188   :  { %v2738_v48 = vmul.f32 %v601_v6, %v2682_v57  ;;  %v602_v4 = vmul.f32 0.5, %v570_v51 }
 0x18a   :  { %v2741_v9 = vmul.f32 %v602_v4, %v2685_v31 }
 0x18b   :  { %2282 = dma.done.wait [#allocation4], 4096 }
 0x18c   :  { %2283 = vsyncadd [#allocation4], 4294963200  ;;  %v640_v26 = vpack.c.bf16 %v2522_v44, %v2514_v34  ;;  %v656_v12 = vld [vmem:[#allocation2 + $0x8] sm:$0xff]  ;;  %v655_v40 = vld [vmem:[#allocation2] sm:$0xff] }
 0x18d   :  { %v658_v56 = vld [vmem:[#allocation2 + $0x18] sm:$0xff]  ;;  %699 = vmatprep.subr.bf16.mxu1 %v656_v12  ;;  %v657_v32 = vld [vmem:[#allocation2 + $0x10] sm:$0xff]  ;;  %v660_v62 = vld [vmem:[#allocation2 + $0x28] sm:$0xff] }
 0x18e   :  { %731 = vmatprep.mubr.bf16.mxu1 %v640_v26  ;;  %700 = vmatpush1.bf16.msra.mxu1 %v655_v40  ;;  %v659_v57 = vld [vmem:[#allocation2 + $0x20] sm:$0xff]  ;;  %v662_v27 = vld [vmem:[#allocation2 + $0x38] sm:$0xff]  ;;  %v661_v31 = vld [vmem:[#allocation2 + $0x30] sm:$0xff] }
 0x18f   :  { %701 = vmatprep.subr.bf16.mxu1 %v658_v56  ;;  %v664_v14 = vld [vmem:[#allocation2 + $0x48] sm:$0xff]  ;;  %v663_v34 = vld [vmem:[#allocation2 + $0x40] sm:$0xff]  ;;  %v666_v44 = vld [vmem:[#allocation2 + $0x58] sm:$0xff]  ;;  %v639_v56 = vpack.c.bf16 %v2517_v38, %v2510_v29  ;;  %v646_v29 = vpack.c.bf16 %v2641_v0, %v2634_v19  ;;  %v645_v38 = vpack.c.bf16 %v2638_v59, %v2628_v18 }
 0x190   :  { %v665_v36 = vld [vmem:[#allocation2 + $0x50] sm:$0xff]  ;;  %v668_v52 = vld [vmem:[#allocation2 + $0x68] sm:$0xff]  ;;  %v667_v15 = vld [vmem:[#allocation2 + $0x60] sm:$0xff] }
 0x191   :  { %v670_v58 = vld [vmem:[#allocation2 + $0x78] sm:$0xff]  ;;  %v669_v30 = vld [vmem:[#allocation2 + $0x70] sm:$0xff]  ;;  %v672_v61 = vld [vmem:[#allocation2 + $0x88] sm:$0xff] }
 0x192   :  { %702 = vmatpush1.bf16.msra.mxu1 %v657_v32  ;;  %v671_v50 = vld [vmem:[#allocation2 + $0x80] sm:$0xff]  ;;  %v674_v39 = vld [vmem:[#allocation2 + $0x98] sm:$0xff]  ;;  %v673_v33 = vld [vmem:[#allocation2 + $0x90] sm:$0xff]  ;;  %v642_v32 = vpack.c.bf16 %v2559_v28, %v2551_v20  ;;  %v648_v20 = vpack.c.bf16 %v2698_v49, %v2673_v53  ;;  %v649_v28 = vpack.c.bf16 %v2710_v8, %v2701_v54 }
 0x193   :  { %703 = vmatprep.subr.bf16.mxu1 %v660_v62  ;;  %v676_v11 = vld [vmem:[#allocation2 + $0xa8] sm:$0xff]  ;;  %v675_v55 = vld [vmem:[#allocation2 + $0xa0] sm:$0xff]  ;;  %v678_v1 = vld [vmem:[#allocation2 + $0xb8] sm:$0xff]  ;;  %v641_v62 = vpack.c.bf16 %v2554_v24, %v2546_v13  ;;  %v647_v13 = vpack.c.bf16 %v2695_v35, %v2652_v23  ;;  %v650_v24 = vpack.c.bf16 %v2716_v47, %v2704_v7 }
 0x194   :  { %v677_v46 = vld [vmem:[#allocation2 + $0xb0] sm:$0xff]  ;;  %v680_v25 = vld [vmem:[#allocation2 + $0xc8] sm:$0xff]  ;;  %v679_v63 = vld [vmem:[#allocation2 + $0xc0] sm:$0xff] }
 0x195   :  { %v682_v6 = vld [vmem:[#allocation2 + $0xd8] sm:$0xff]  ;;  %v681_v51 = vld [vmem:[#allocation2 + $0xd0] sm:$0xff]  ;;  %v684_v4 = vld [vmem:[#allocation2 + $0xe8] sm:$0xff] }
 0x196   :  { %704 = vmatpush1.bf16.msra.mxu1 %v659_v57  ;;  %v683_v26 = vld [vmem:[#allocation2 + $0xe0] sm:$0xff]  ;;  %v686_v12 = vld [vmem:[#allocation2 + $0xf8] sm:$0xff]  ;;  %v685_v40 = vld [vmem:[#allocation2 + $0xf0] sm:$0xff]  ;;  %v644_v57 = vpack.c.bf16 %v2588_v22, %v2576_v10  ;;  %v651_v10 = vpack.c.bf16 %v2726_v21, %v2720_v5  ;;  %v653_v22 = vpack.c.bf16 %v2738_v48, %v2732_v16 }
 0x197   :  { %705 = vmatprep.subr.bf16.mxu1 %v662_v27  ;;  %v643_v27 = vpack.c.bf16 %v2579_v17, %v2572_v3  ;;  %v652_v3 = vpack.c.bf16 %v2729_v37, %v2723_v2  ;;  %v654_v17 = vpack.c.bf16 %v2741_v9, %v2735_v60  ;;  %v687_v18 = vld [vmem:[%s3830_s4] sm:$0x3] }
 0x198   :  { %v2780_v19 = vrot.slane %v687_v18, %v146_v43  ;;  %v2784_v59 = vrot.slane %v687_v18, %v150_v45 }
 0x19a   :  { %706 = vmatpush1.bf16.msra.mxu1 %v661_v31 }
 0x19b   :  { %707 = vmatprep.subr.bf16.mxu1 %v664_v14 }
 0x19e   :  { %708 = vmatpush1.bf16.msra.mxu1 %v663_v34 }
 0x19f   :  { %709 = vmatprep.subr.bf16.mxu1 %v666_v44 }
 0x1a2   :  { %710 = vmatpush1.bf16.msra.mxu1 %v665_v36 }
 0x1a3   :  { %711 = vmatprep.subr.bf16.mxu1 %v668_v52 }
 0x1a6   :  { %712 = vmatpush1.bf16.msra.mxu1 %v667_v15 }
 0x1a7   :  { %713 = vmatprep.subr.bf16.mxu1 %v670_v58 }
 0x1aa   :  { %714 = vmatpush1.bf16.msra.mxu1 %v669_v30 }
 0x1ab   :  { %715 = vmatprep.subr.bf16.mxu1 %v672_v61 }
 0x1ae   :  { %716 = vmatpush1.bf16.msra.mxu1 %v671_v50 }
 0x1af   :  { %717 = vmatprep.subr.bf16.mxu1 %v674_v39 }
 0x1b2   :  { %718 = vmatpush1.bf16.msra.mxu1 %v673_v33 }
 0x1b3   :  { %719 = vmatprep.subr.bf16.mxu1 %v676_v11 }
 0x1b6   :  { %720 = vmatpush1.bf16.msra.mxu1 %v675_v55 }
 0x1b7   :  { %721 = vmatprep.subr.bf16.mxu1 %v678_v1 }
 0x1ba   :  { %722 = vmatpush1.bf16.msra.mxu1 %v677_v46 }
 0x1bb   :  { %723 = vmatprep.subr.bf16.mxu1 %v680_v25 }
 0x1be   :  { %724 = vmatpush1.bf16.msra.mxu1 %v679_v63 }
 0x1bf   :  { %725 = vmatprep.subr.bf16.mxu1 %v682_v6 }
 0x1c2   :  { %726 = vmatpush1.bf16.msra.mxu1 %v681_v51 }
 0x1c3   :  { %727 = vmatprep.subr.bf16.mxu1 %v684_v4 }
 0x1c6   :  { %728 = vmatpush1.bf16.msra.mxu1 %v683_v26 }
 0x1c7   :  { %729 = vmatprep.subr.bf16.mxu1 %v686_v12 }
 0x1ca   :  { %730 = vmatpush1.bf16.msra.mxu1 %v685_v40 }
 0x1cd   :  { %732 = vmatmul.mubr.bf16.vlgmr.msra.gmra.mrb[0].mxu1 %v639_v56 }
 0x1ce   :  { %741 = vmatprep.mubr.bf16.mxu1 %v642_v32 }
 0x1d5   :  { %742 = vmatmul.mubr.bf16.gmra.mrb[4].mxu1 %v641_v62 }
 0x1d6   :  { %751 = vmatprep.mubr.bf16.mxu1 %v644_v57 }
 0x1dd   :  { %752 = vmatmul.mubr.bf16.gmra.mrb[8].mxu1 %v643_v27 }
 0x1de   :  { %761 = vmatprep.mubr.bf16.mxu1 %v646_v29 }
 0x1e5   :  { %762 = vmatmul.mubr.bf16.gmra.mrb[12].mxu1 %v645_v38 }
 0x1e6   :  { %771 = vmatprep.mubr.bf16.mxu1 %v648_v20 }
 0x1ed   :  { %772 = vmatmul.mubr.bf16.gmra.mrb[16].mxu1 %v647_v13 }
 0x1ee   :  { %781 = vmatprep.mubr.bf16.mxu1 %v650_v24 }
 0x1f5   :  { %782 = vmatmul.mubr.bf16.gmra.mrb[20].mxu1 %v649_v28 }
 0x1f6   :  { %791 = vmatprep.mubr.bf16.mxu1 %v652_v3 }
 0x1fd   :  { %792 = vmatmul.mubr.bf16.gmra.mrb[24].mxu1 %v651_v10 }
 0x1fe   :  { %801 = vmatprep.mubr.bf16.mxu1 %v654_v17 }
 0x205   :  { %802 = vmatmul.mubr.bf16.gmra.mrb[28].mxu1 %v653_v22 }
 0x2a0   :  { %v733_v0 = vpop.f32.mrb[0].mxu1 }
 0x2a1   :  { %v2787_v23 = vadd.f32 %v733_v0, %v2780_v19  ;;  %v735_v53 = vpop.f32.mrb[1].mxu1 }
 0x2a2   :  { %v2790_v35 = vadd.f32 %v735_v53, %v2784_v59  ;;  %v737_v49 = vpop.f32.mrb[2].mxu1 }
 0x2a3   :  { %v812_v54 = vmul.f32 %v2787_v23, %v2787_v23  ;;  %v2795_v7 = vadd.f32 %v737_v49, %v2780_v19  ;;  %v739_v43 = vpop.f32.mrb[3].mxu1 }
 0x2a4   :  { %v813_v42 = vmul.f32 %v2790_v35, %v2790_v35  ;;  %v2800_v45 = vadd.f32 %v739_v43, %v2784_v59 }
 0x2a5   :  { %v844_v8 = vmul.f32 %v812_v54, %v2787_v23  ;;  %v814_v47 = vmul.f32 %v2795_v7, %v2795_v7 }
 0x2a6   :  { %v845_v5 = vmul.f32 %v813_v42, %v2790_v35  ;;  %v815_v2 = vmul.f32 %v2800_v45, %v2800_v45 }
 0x2a7   :  { %v876_v21 = vmul.f32 0.044715, %v844_v8  ;;  %v846_v37 = vmul.f32 %v814_v47, %v2795_v7 }
 0x2a8   :  { %v877_v16 = vmul.f32 0.044715, %v845_v5  ;;  %v847_v60 = vmul.f32 %v815_v2, %v2800_v45  ;;  %v743_v48 = vpop.f32.mrb[4].mxu1 }
 0x2a9   :  { %v908_v9 = vadd.f32 %v876_v21, %v2787_v23  ;;  %v878_v31 = vmul.f32 0.044715, %v846_v37  ;;  %v2812_v14 = vadd.f32 %v743_v48, %v2780_v19  ;;  %v745_v34 = vpop.f32.mrb[5].mxu1 }
 0x2aa   :  { %v909_v44 = vadd.f32 %v877_v16, %v2790_v35  ;;  %v879_v36 = vmul.f32 0.044715, %v847_v60  ;;  %v2816_v52 = vadd.f32 %v745_v34, %v2784_v59  ;;  %v747_v15 = vpop.f32.mrb[6].mxu1 }
 0x2ab   :  { %v940_v58 = vmul.f32 0.7978846, %v908_v9  ;;  %v910_v30 = vadd.f32 %v878_v31, %v2795_v7  ;;  %v816_v61 = vmul.f32 %v2812_v14, %v2812_v14  ;;  %v2822_v50 = vadd.f32 %v747_v15, %v2780_v19  ;;  %v749_v39 = vpop.f32.mrb[7].mxu1 }
 0x2ac   :  { %v941_v33 = vmul.f32 0.7978846, %v909_v44  ;;  %v911_v11 = vadd.f32 %v879_v36, %v2800_v45  ;;  %v817_v55 = vmul.f32 %v2816_v52, %v2816_v52  ;;  %v2828_v1 = vadd.f32 %v749_v39, %v2784_v59 }
 0x2ad   :  { %2062 = vtanh.f32 %v940_v58  ;;  %v942_v46 = vmul.f32 0.7978846, %v910_v30  ;;  %v848_v25 = vmul.f32 %v816_v61, %v2812_v14  ;;  %v818_v63 = vmul.f32 %v2822_v50, %v2822_v50 }
 0x2ae   :  { %2064 = vtanh.f32 %v941_v33  ;;  %v943_v6 = vmul.f32 0.7978846, %v911_v11  ;;  %v849_v51 = vmul.f32 %v817_v55, %v2816_v52  ;;  %v819_v4 = vmul.f32 %v2828_v1, %v2828_v1 }
 0x2af   :  { %2066 = vtanh.f32 %v942_v46  ;;  %v880_v26 = vmul.f32 0.044715, %v848_v25  ;;  %v850_v12 = vmul.f32 %v818_v63, %v2822_v50 }
 0x2b0   :  { %2068 = vtanh.f32 %v943_v6  ;;  %v881_v40 = vmul.f32 0.044715, %v849_v51  ;;  %v851_v56 = vmul.f32 %v819_v4, %v2828_v1  ;;  %v753_v32 = vpop.f32.mrb[8].mxu1 }
 0x2b1   :  { %v912_v62 = vadd.f32 %v880_v26, %v2812_v14  ;;  %v882_v57 = vmul.f32 0.044715, %v850_v12  ;;  %v2840_v27 = vadd.f32 %v753_v32, %v2780_v19  ;;  %v755_v29 = vpop.f32.mrb[9].mxu1 }
 0x2b2   :  { %v913_v38 = vadd.f32 %v881_v40, %v2816_v52  ;;  %v883_v20 = vmul.f32 0.044715, %v851_v56  ;;  %v2844_v13 = vadd.f32 %v755_v29, %v2784_v59  ;;  %v757_v24 = vpop.f32.mrb[10].mxu1 }
 0x2b3   :  { %v944_v28 = vmul.f32 0.7978846, %v912_v62  ;;  %v914_v3 = vadd.f32 %v882_v57, %v2822_v50  ;;  %v820_v10 = vmul.f32 %v2840_v27, %v2840_v27  ;;  %v2850_v17 = vadd.f32 %v757_v24, %v2780_v19  ;;  %v759_v22 = vpop.f32.mrb[11].mxu1 }
 0x2b4   :  { %v945_v18 = vmul.f32 0.7978846, %v913_v38  ;;  %v915_v0 = vadd.f32 %v883_v20, %v2828_v1  ;;  %v821_v53 = vmul.f32 %v2844_v13, %v2844_v13  ;;  %v2856_v49 = vadd.f32 %v759_v22, %v2784_v59 }
 0x2b5   :  { %2070 = vtanh.f32 %v944_v28  ;;  %v946_v54 = vmul.f32 0.7978846, %v914_v3  ;;  %v852_v43 = vmul.f32 %v820_v10, %v2840_v27  ;;  %v822_v42 = vmul.f32 %v2850_v17, %v2850_v17 }
 0x2b6   :  { %2072 = vtanh.f32 %v945_v18  ;;  %v947_v8 = vmul.f32 0.7978846, %v915_v0  ;;  %v853_v47 = vmul.f32 %v821_v53, %v2844_v13  ;;  %v823_v5 = vmul.f32 %v2856_v49, %v2856_v49 }
 0x2b7   :  { %v2063_v2 = vpop.eup %2062  ;;  %2074 = vtanh.f32 %v946_v54  ;;  %v884_v21 = vmul.f32 0.044715, %v852_v43  ;;  %v854_v37 = vmul.f32 %v822_v42, %v2850_v17 }
 0x2b8   :  { %v2065_v16 = vpop.eup %2064  ;;  %v1004_v60 = vadd.f32 1.0, %v2063_v2  ;;  %2076 = vtanh.f32 %v947_v8  ;;  %v885_v48 = vmul.f32 0.044715, %v853_v47  ;;  %v855_v9 = vmul.f32 %v823_v5, %v2856_v49  ;;  %v763_v31 = vpop.f32.mrb[12].mxu1 }
 0x2b9   :  { %v2067_v34 = vpop.eup %2066  ;;  %v1005_v44 = vadd.f32 1.0, %v2065_v16  ;;  %v916_v36 = vadd.f32 %v884_v21, %v2840_v27  ;;  %v886_v15 = vmul.f32 0.044715, %v854_v37  ;;  %v2868_v58 = vadd.f32 %v763_v31, %v2780_v19  ;;  %v765_v30 = vpop.f32.mrb[13].mxu1 }
 0x2ba   :  { %v2069_v61 = vpop.eup %2068  ;;  %v1036_v39 = vmul.f32 0.5, %v1004_v60  ;;  %v1006_v33 = vadd.f32 1.0, %v2067_v34  ;;  %v917_v11 = vadd.f32 %v885_v48, %v2844_v13  ;;  %v887_v55 = vmul.f32 0.044715, %v855_v9  ;;  %v767_v46 = vpop.f32.mrb[14].mxu1 }
 0x2bb   :  { %v1037_v25 = vmul.f32 0.5, %v1005_v44  ;;  %v1007_v63 = vadd.f32 1.0, %v2069_v61  ;;  %v948_v6 = vmul.f32 0.7978846, %v916_v36  ;;  %v918_v51 = vadd.f32 %v886_v15, %v2850_v17  ;;  %v769_v4 = vpop.f32.mrb[15].mxu1 }
 0x2bc   :  { %v2873_v26 = vmul.f32 %v1036_v39, %v2787_v23  ;;  %v1038_v12 = vmul.f32 0.5, %v1006_v33  ;;  %v949_v40 = vmul.f32 0.7978846, %v917_v11  ;;  %v919_v56 = vadd.f32 %v887_v55, %v2856_v49 }
 0x2bd   :  { %v2877_v32 = vmul.f32 %v1037_v25, %v2790_v35  ;;  %v1039_v62 = vmul.f32 0.5, %v1007_v63  ;;  %2078 = vtanh.f32 %v948_v6  ;;  %v950_v57 = vmul.f32 0.7978846, %v918_v51 }
 0x2be   :  { %v2880_v29 = vmul.f32 %v1038_v12, %v2795_v7  ;;  %2080 = vtanh.f32 %v949_v40  ;;  %v951_v38 = vmul.f32 0.7978846, %v919_v56  ;;  %v824_v20 = vmul.f32 %v2868_v58, %v2868_v58 }
 0x2bf   :  { %v2071_v23 = vpop.eup %2070  ;;  %v1864_v24 = vpack.c.bf16 %v2877_v32, %v2873_v26  ;;  %v2887_v28 = vmul.f32 %v1039_v62, %v2800_v45  ;;  %2082 = vtanh.f32 %v950_v57  ;;  %v2890_v35 = vadd.f32 %v765_v30, %v2784_v59 }
 0x2c0   :  { %v2073_v3 = vpop.eup %2072  ;;  %v1100_v7 = vpack.c.bf16 %v2880_v29, %v2873_v26  ;;  %v1008_v10 = vadd.f32 1.0, %v2071_v23  ;;  %2084 = vtanh.f32 %v951_v38  ;;  %v856_v22 = vmul.f32 %v824_v20, %v2868_v58  ;;  %v773_v18 = vpop.f32.mrb[16].mxu1 }
 0x2c1   :  { %v2075_v0 = vpop.eup %2074  ;;  %1196 = vst [vmem:[#allocation10] sm:$0xff] %v1864_v24  ;;  %v1101_v53 = vpack.c.bf16 %v2887_v28, %v2877_v32  ;;  %v1865_v45 = vpack.c.bf16 %v2887_v28, %v2880_v29  ;;  %v1009_v54 = vadd.f32 1.0, %v2073_v3  ;;  %v825_v43 = vmul.f32 %v2890_v35, %v2890_v35  ;;  %v775_v42 = vpop.f32.mrb[17].mxu1 }
 0x2c2   :  { %v2077_v8 = vpop.eup %2076  ;;  %v1040_v47 = vmul.f32 0.5, %v1008_v10  ;;  %v1010_v5 = vadd.f32 1.0, %v2075_v0  ;;  %v888_v2 = vmul.f32 0.044715, %v856_v22  ;;  %v2902_v21 = vadd.f32 %v767_v46, %v2780_v19  ;;  %v777_v37 = vpop.f32.mrb[18].mxu1 }
 0x2c3   :  { %1197 = vst [vmem:[#allocation10 + $0x8] sm:$0xff] %v1865_v45  ;;  %v1041_v16 = vmul.f32 0.5, %v1009_v54  ;;  %v1011_v60 = vadd.f32 1.0, %v2077_v8  ;;  %v857_v48 = vmul.f32 %v825_v43, %v2890_v35  ;;  %v2906_v9 = vadd.f32 %v769_v4, %v2784_v59  ;;  %v779_v31 = vpop.f32.mrb[19].mxu1 }
 0x2c4   :  { %v2909_v34 = vmul.f32 %v1040_v47, %v2812_v14  ;;  %v1042_v44 = vmul.f32 0.5, %v1010_v5  ;;  %v920_v36 = vadd.f32 %v888_v2, %v2868_v58  ;;  %v826_v15 = vmul.f32 %v2902_v21, %v2902_v21 }
 0x2c5   :  { %v2915_v30 = vmul.f32 %v1041_v16, %v2816_v52  ;;  %v1043_v61 = vmul.f32 0.5, %v1011_v60  ;;  %v889_v39 = vmul.f32 0.044715, %v857_v48  ;;  %v827_v33 = vmul.f32 %v2906_v9, %v2906_v9 }
 0x2c6   :  { %v2920_v11 = vmul.f32 %v1042_v44, %v2822_v50  ;;  %v952_v55 = vmul.f32 0.7978846, %v920_v36  ;;  %v858_v14 = vmul.f32 %v826_v15, %v2902_v21  ;;  %v2924_v46 = vadd.f32 %v773_v18, %v2780_v19 }
 0x2c7   :  { %v2079_v25 = vpop.eup %2078  ;;  %v1866_v63 = vpack.c.bf16 %v2915_v30, %v2909_v34  ;;  %v2929_v52 = vmul.f32 %v1043_v61, %v2828_v1  ;;  %v921_v6 = vadd.f32 %v889_v39, %v2890_v35  ;;  %v859_v51 = vmul.f32 %v827_v33, %v2906_v9 }
 0x2c8   :  { %v2081_v4 = vpop.eup %2080  ;;  %v1102_v50 = vpack.c.bf16 %v2920_v11, %v2909_v34  ;;  %v1012_v12 = vadd.f32 1.0, %v2079_v25  ;;  %2086 = vtanh.f32 %v952_v55  ;;  %v890_v40 = vmul.f32 0.044715, %v858_v14  ;;  %v783_v56 = vpop.f32.mrb[20].mxu1 }
 0x2c9   :  { %v2083_v62 = vpop.eup %2082  ;;  %1198 = vst [vmem:[#allocation10 + $0x10] sm:$0xff] %v1866_v63  ;;  %v1103_v57 = vpack.c.bf16 %v2929_v52, %v2915_v30  ;;  %v1867_v1 = vpack.c.bf16 %v2929_v52, %v2920_v11  ;;  %v1013_v38 = vadd.f32 1.0, %v2081_v4  ;;  %v953_v20 = vmul.f32 0.7978846, %v921_v6  ;;  %v785_v23 = vpop.f32.mrb[21].mxu1 }
 0x2ca   :  { %v2085_v24 = vpop.eup %2084  ;;  %v1044_v3 = vmul.f32 0.5, %v1012_v12  ;;  %v1014_v10 = vadd.f32 1.0, %v2083_v62  ;;  %v922_v22 = vadd.f32 %v890_v40, %v2902_v21  ;;  %v891_v18 = vmul.f32 0.044715, %v859_v51  ;;  %v787_v0 = vpop.f32.mrb[22].mxu1 }
 0x2cb   :  { %1199 = vst [vmem:[#allocation10 + $0x18] sm:$0xff] %v1867_v1  ;;  %v1045_v45 = vmul.f32 0.5, %v1013_v38  ;;  %v1015_v54 = vadd.f32 1.0, %v2085_v24  ;;  %2088 = vtanh.f32 %v953_v20  ;;  %v828_v43 = vmul.f32 %v2924_v46, %v2924_v46  ;;  %v2942_v8 = vpop.f32.mrb[23].mxu1 }
 0x2cc   :  { %v2945_v47 = vmul.f32 %v1044_v3, %v2840_v27  ;;  %v1046_v5 = vmul.f32 0.5, %v1014_v10  ;;  %v954_v2 = vmul.f32 0.7978846, %v922_v22  ;;  %v923_v16 = vadd.f32 %v891_v18, %v2906_v9 }
 0x2cd   :  { %v2949_v60 = vmul.f32 %v1045_v45, %v2844_v13  ;;  %v1047_v48 = vmul.f32 0.5, %v1015_v54  ;;  %v860_v44 = vmul.f32 %v828_v43, %v2924_v46  ;;  %v2953_v36 = vadd.f32 %v775_v42, %v2784_v59 }
 0x2ce   :  { %v2956_v15 = vmul.f32 %v1046_v5, %v2850_v17  ;;  %2090 = vtanh.f32 %v954_v2  ;;  %v955_v61 = vmul.f32 0.7978846, %v923_v16  ;;  %v2959_v27 = vadd.f32 %v777_v37, %v2780_v19 }
 0x2cf   :  { %v1868_v39 = vpack.c.bf16 %v2949_v60, %v2945_v47  ;;  %v2964_v13 = vmul.f32 %v1047_v48, %v2856_v49  ;;  %v892_v33 = vmul.f32 0.044715, %v860_v44  ;;  %v829_v55 = vmul.f32 %v2953_v36, %v2953_v36 }
 0x2d0   :  { %v1104_v42 = vpack.c.bf16 %v2956_v15, %v2945_v47  ;;  %2092 = vtanh.f32 %v955_v61  ;;  %v830_v17 = vmul.f32 %v2959_v27, %v2959_v27  ;;  %v2973_v37 = vadd.f32 %v779_v31, %v2784_v59  ;;  %v2975_v14 = vpop.f32.mrb[24].mxu1 }
 0x2d1   :  { %1200 = vst [vmem:[#allocation10 + $0x20] sm:$0xff] %v1868_v39  ;;  %v1105_v49 = vpack.c.bf16 %v2964_v13, %v2949_v60  ;;  %v1869_v25 = vpack.c.bf16 %v2964_v13, %v2956_v15  ;;  %v924_v63 = vadd.f32 %v892_v33, %v2924_v46  ;;  %v861_v6 = vmul.f32 %v829_v55, %v2953_v36  ;;  %v2983_v51 = vpop.f32.mrb[25].mxu1 }
 0x2d2   :  { %v2087_v4 = vpop.eup %2086  ;;  %v862_v12 = vmul.f32 %v830_v17, %v2959_v27  ;;  %v831_v31 = vmul.f32 %v2973_v37, %v2973_v37  ;;  %v2989_v40 = vadd.f32 %v783_v56, %v2780_v19  ;;  %v2992_v62 = vadd.f32 %v785_v23, %v2784_v59  ;;  %v2994_v1 = vpop.f32.mrb[26].mxu1 }
 0x2d3   :  { %1201 = vst [vmem:[#allocation10 + $0x28] sm:$0xff] %v1869_v25  ;;  %v1016_v38 = vadd.f32 1.0, %v2087_v4  ;;  %v956_v20 = vmul.f32 0.7978846, %v924_v63  ;;  %v893_v24 = vmul.f32 0.044715, %v861_v6  ;;  %v2997_v3 = vadd.f32 %v787_v0, %v2780_v19 }
 0x2d4   :  { %v2999_v10 = vpop.f32.mrb[27].mxu1  ;;  %v894_v22 = vmul.f32 0.044715, %v862_v12  ;;  %v863_v18 = vmul.f32 %v831_v31, %v2973_v37  ;;  %v832_v56 = vmul.f32 %v2989_v40, %v2989_v40  ;;  %v833_v23 = vmul.f32 %v2992_v62, %v2992_v62 }
 0x2d5   :  { %v2089_v45 = vpop.eup %2088  ;;  %v1048_v54 = vmul.f32 0.5, %v1016_v38  ;;  %2094 = vtanh.f32 %v956_v20  ;;  %v925_v43 = vadd.f32 %v893_v24, %v2953_v36  ;;  %v834_v0 = vmul.f32 %v2997_v3, %v2997_v3 }
 0x2d6   :  { %v1017_v5 = vadd.f32 1.0, %v2089_v45  ;;  %v926_v2 = vadd.f32 %v894_v22, %v2959_v27  ;;  %v895_v16 = vmul.f32 0.044715, %v863_v18  ;;  %v864_v48 = vmul.f32 %v832_v56, %v2989_v40 }
 0x2d7   :  { %v3012_v44 = vmul.f32 %v1048_v54, %v2868_v58  ;;  %v957_v61 = vmul.f32 0.7978846, %v925_v43  ;;  %v865_v39 = vmul.f32 %v833_v23, %v2992_v62  ;;  %v866_v33 = vmul.f32 %v834_v0, %v2997_v3 }
 0x2d8   :  { %v2091_v55 = vpop.eup %2090  ;;  %v1049_v17 = vmul.f32 0.5, %v1017_v5  ;;  %v958_v25 = vmul.f32 0.7978846, %v926_v2  ;;  %v927_v63 = vadd.f32 %v895_v16, %v2973_v37  ;;  %v896_v6 = vmul.f32 0.044715, %v864_v48  ;;  %v803_v4 = vpop.f32.mrb[28].mxu1 }
 0x2d9   :  { %v1018_v12 = vadd.f32 1.0, %v2091_v55  ;;  %2096 = vtanh.f32 %v957_v61  ;;  %v897_v31 = vmul.f32 0.044715, %v865_v39  ;;  %v898_v38 = vmul.f32 0.044715, %v866_v33  ;;  %v805_v20 = vpop.f32.mrb[29].mxu1 }
 0x2da   :  { %v2093_v24 = vpop.eup %2092  ;;  %v3018_v58 = vmul.f32 %v1049_v17, %v2890_v35  ;;  %2098 = vtanh.f32 %v958_v25  ;;  %v959_v22 = vmul.f32 0.7978846, %v927_v63  ;;  %v928_v18 = vadd.f32 %v896_v6, %v2989_v40  ;;  %v3021_v56 = vpop.f32.mrb[30].mxu1 }
 0x2db   :  { %v1050_v23 = vmul.f32 0.5, %v1018_v12  ;;  %v1019_v45 = vadd.f32 1.0, %v2093_v24  ;;  %v929_v54 = vadd.f32 %v897_v31, %v2992_v62  ;;  %v930_v43 = vadd.f32 %v898_v38, %v2997_v3  ;;  %v3025_v0 = vpop.f32.mrb[31].mxu1 }
 0x2dc   :  { %v1870_v5 = vpack.c.bf16 %v3018_v58, %v3012_v44  ;;  %2100 = vtanh.f32 %v959_v22  ;;  %v960_v35 = vmul.f32 0.7978846, %v928_v18  ;;  %v3031_v2 = vadd.f32 %v2942_v8, %v2784_v59 }
 0x2dd   :  { %v3034_v16 = vmul.f32 %v1050_v23, %v2902_v21  ;;  %v1051_v48 = vmul.f32 0.5, %v1019_v45  ;;  %v961_v61 = vmul.f32 0.7978846, %v929_v54  ;;  %v962_v39 = vmul.f32 0.7978846, %v930_v43 }
 0x2de   :  { %1202 = vst [vmem:[#allocation10 + $0x30] sm:$0xff] %v1870_v5  ;;  %2102 = vtanh.f32 %v960_v35  ;;  %v835_v33 = vmul.f32 %v3031_v2, %v3031_v2  ;;  %v3040_v55 = vadd.f32 %v2975_v14, %v2780_v19  ;;  %v3044_v17 = vadd.f32 %v2983_v51, %v2784_v59 }
 0x2df   :  { %v2095_v8 = vpop.eup %2094  ;;  %v1106_v21 = vpack.c.bf16 %v3034_v16, %v3012_v44  ;;  %v3049_v25 = vmul.f32 %v1051_v48, %v2906_v9  ;;  %2104 = vtanh.f32 %v961_v61  ;;  %v3053_v63 = vadd.f32 %v2994_v1, %v2780_v19 }
 0x2e0   :  { %v1020_v6 = vadd.f32 1.0, %v2095_v8  ;;  %2106 = vtanh.f32 %v962_v39  ;;  %v867_v14 = vmul.f32 %v835_v33, %v3031_v2  ;;  %v836_v51 = vmul.f32 %v3040_v55, %v3040_v55 }
 0x2e1   :  { %v1107_v12 = vpack.c.bf16 %v3049_v25, %v3018_v58  ;;  %v1871_v31 = vpack.c.bf16 %v3049_v25, %v3034_v16  ;;  %v837_v9 = vmul.f32 %v3044_v17, %v3044_v17  ;;  %v838_v1 = vmul.f32 %v3053_v63, %v3053_v63 }
 0x2e2   :  { %v1052_v38 = vmul.f32 0.5, %v1020_v6  ;;  %v899_v24 = vmul.f32 0.044715, %v867_v14  ;;  %v868_v22 = vmul.f32 %v836_v51, %v3040_v55  ;;  %v3069_v18 = vadd.f32 %v2999_v10, %v2784_v59 }
 0x2e3   :  { %v2097_v23 = vpop.eup %2096  ;;  %1203 = vst [vmem:[#allocation10 + $0x38] sm:$0xff] %v1871_v31  ;;  %v869_v45 = vmul.f32 %v837_v9, %v3044_v17  ;;  %v870_v54 = vmul.f32 %v838_v1, %v3053_v63  ;;  %v3074_v43 = vadd.f32 %v803_v4, %v2780_v19  ;;  %v3077_v5 = vadd.f32 %v805_v20, %v2784_v59 }
 0x2e4   :  { %v2099_v35 = vpop.eup %2098  ;;  %v3080_v48 = vmul.f32 %v1052_v38, %v2924_v46  ;;  %v1021_v61 = vadd.f32 1.0, %v2097_v23  ;;  %v931_v10 = vadd.f32 %v899_v24, %v3031_v2  ;;  %v900_v39 = vmul.f32 0.044715, %v868_v22 }
 0x2e5   :  { %v1022_v33 = vadd.f32 1.0, %v2099_v35  ;;  %v901_v8 = vmul.f32 0.044715, %v869_v45  ;;  %v902_v6 = vmul.f32 0.044715, %v870_v54  ;;  %v839_v14 = vmul.f32 %v3069_v18, %v3069_v18 }
 0x2e6   :  { %v2101_v51 = vpop.eup %2100  ;;  %v1053_v4 = vmul.f32 0.5, %v1021_v61  ;;  %v963_v31 = vmul.f32 0.7978846, %v931_v10  ;;  %v932_v20 = vadd.f32 %v900_v39, %v3040_v55  ;;  %v840_v9 = vmul.f32 %v3074_v43, %v3074_v43 }
 0x2e7   :  { %v1054_v46 = vmul.f32 0.5, %v1022_v33  ;;  %v1023_v1 = vadd.f32 1.0, %v2101_v51  ;;  %v933_v38 = vadd.f32 %v901_v8, %v3044_v17  ;;  %v934_v24 = vadd.f32 %v902_v6, %v3053_v63 }
 0x2e8   :  { %v2103_v22 = vpop.eup %2102  ;;  %v3091_v23 = vmul.f32 %v1053_v4, %v2953_v36  ;;  %2108 = vtanh.f32 %v963_v31  ;;  %v964_v45 = vmul.f32 0.7978846, %v932_v20  ;;  %v871_v54 = vmul.f32 %v839_v14, %v3069_v18 }
 0x2e9   :  { %v2105_v35 = vpop.eup %2104  ;;  %v3095_v61 = vmul.f32 %v1054_v46, %v2959_v27  ;;  %v1055_v10 = vmul.f32 0.5, %v1023_v1  ;;  %v1024_v39 = vadd.f32 1.0, %v2103_v22  ;;  %v965_v33 = vmul.f32 0.7978846, %v933_v38 }
 0x2ea   :  { %v2107_v51 = vpop.eup %2106  ;;  %v1872_v8 = vpack.c.bf16 %v3091_v23, %v3080_v48  ;;  %v1025_v6 = vadd.f32 1.0, %v2105_v35  ;;  %2110 = vtanh.f32 %v964_v45  ;;  %v966_v41 = vmul.f32 0.7978846, %v934_v24 }
 0x2eb   :  { %v1108_v36 = vpack.c.bf16 %v3095_v61, %v3080_v48  ;;  %v3102_v4 = vmul.f32 %v1055_v10, %v2973_v37  ;;  %v1056_v14 = vmul.f32 0.5, %v1024_v39  ;;  %v1026_v31 = vadd.f32 1.0, %v2107_v51 }
 0x2ec   :  { %1204 = vst [vmem:[#allocation10 + $0x40] sm:$0xff] %v1872_v8  ;;  %v1057_v27 = vmul.f32 0.5, %v1025_v6  ;;  %2112 = vtanh.f32 %v965_v33  ;;  %v903_v20 = vmul.f32 0.044715, %v871_v54  ;;  %v872_v46 = vmul.f32 %v840_v9, %v3074_v43 }
 0x2ed   :  { %v1109_v1 = vpack.c.bf16 %v3102_v4, %v3091_v23  ;;  %v1873_v38 = vpack.c.bf16 %v3102_v4, %v3095_v61  ;;  %v3110_v24 = vmul.f32 %v1056_v14, %v2989_v40  ;;  %v1058_v22 = vmul.f32 0.5, %v1026_v31 }
 0x2ee   :  { %v3113_v37 = vmul.f32 %v1057_v27, %v2992_v62  ;;  %2114 = vtanh.f32 %v966_v41  ;;  %v935_v45 = vadd.f32 %v903_v20, %v3069_v18  ;;  %v904_v35 = vmul.f32 0.044715, %v872_v46 }
 0x2ef   :  { %1205 = vst [vmem:[#allocation10 + $0x48] sm:$0xff] %v1873_v38  ;;  %v3117_v9 = vmul.f32 %v1058_v22, %v2997_v3  ;;  %v841_v54 = vmul.f32 %v3077_v5, %v3077_v5  ;;  %v3123_v10 = vadd.f32 %v3021_v56, %v2780_v19  ;;  %v3127_v40 = vadd.f32 %v3025_v0, %v2784_v59 }
 0x2f0   :  { %v1874_v41 = vpack.c.bf16 %v3113_v37, %v3110_v24  ;;  %v967_v62 = vmul.f32 0.7978846, %v935_v45  ;;  %v936_v39 = vadd.f32 %v904_v35, %v3074_v43 }
 0x2f1   :  { %v1110_v3 = vpack.c.bf16 %v3117_v9, %v3110_v24  ;;  %v873_v33 = vmul.f32 %v841_v54, %v3077_v5  ;;  %v842_v51 = vmul.f32 %v3123_v10, %v3123_v10  ;;  %v843_v19 = vmul.f32 %v3127_v40, %v3127_v40 }
 0x2f2   :  { %v2109_v56 = vpop.eup %2108  ;;  %1206 = vst [vmem:[#allocation10 + $0x50] sm:$0xff] %v1874_v41  ;;  %2116 = vtanh.f32 %v967_v62  ;;  %v968_v59 = vmul.f32 0.7978846, %v936_v39 }
 0x2f3   :  { %v1027_v0 = vadd.f32 1.0, %v2109_v56  ;;  %v905_v8 = vmul.f32 0.044715, %v873_v33  ;;  %v874_v6 = vmul.f32 %v842_v51, %v3123_v10  ;;  %v875_v14 = vmul.f32 %v843_v19, %v3127_v40 }
 0x2f4   :  { %v2111_v31 = vpop.eup %2110  ;;  %2118 = vtanh.f32 %v968_v59 }
 0x2f5   :  { %v1059_v27 = vmul.f32 0.5, %v1027_v0  ;;  %v1028_v20 = vadd.f32 1.0, %v2111_v31  ;;  %v937_v46 = vadd.f32 %v905_v8, %v3077_v5  ;;  %v906_v38 = vmul.f32 0.044715, %v874_v6 }
 0x2f6   :  { %v2113_v22 = vpop.eup %2112  ;;  %v907_v45 = vmul.f32 0.044715, %v875_v14 }
 0x2f7   :  { %v3143_v35 = vmul.f32 %v1059_v27, %v3031_v2  ;;  %v1060_v54 = vmul.f32 0.5, %v1028_v20  ;;  %v1029_v41 = vadd.f32 1.0, %v2113_v22  ;;  %v969_v62 = vmul.f32 0.7978846, %v937_v46 }
 0x2f8   :  { %v2115_v39 = vpop.eup %2114  ;;  %v938_v33 = vadd.f32 %v906_v38, %v3123_v10  ;;  %v939_v51 = vadd.f32 %v907_v45, %v3127_v40 }
 0x2f9   :  { %v1111_v19 = vpack.c.bf16 %v3143_v35, %v3113_v37  ;;  %v1875_v56 = vpack.c.bf16 %v3143_v35, %v3117_v9  ;;  %v3152_v59 = vmul.f32 %v1060_v54, %v3040_v55  ;;  %v1061_v0 = vmul.f32 0.5, %v1029_v41 }
 0x2fa   :  { %v1030_v2 = vadd.f32 1.0, %v2115_v39  ;;  %2120 = vtanh.f32 %v969_v62  ;;  %v970_v8 = vmul.f32 0.7978846, %v938_v33  ;;  %v971_v6 = vmul.f32 0.7978846, %v939_v51 }
 0x2fb   :  { %1207 = vst [vmem:[#allocation10 + $0x58] sm:$0xff] %v1875_v56  ;;  %v1093_v14 = vmul.f32 %v1061_v0, %v3044_v17 }
 0x2fc   :  { %v2117_v31 = vpop.eup %2116  ;;  %v1062_v27 = vmul.f32 0.5, %v1030_v2  ;;  %2122 = vtanh.f32 %v970_v8 }
 0x2fd   :  { %v1876_v20 = vpack.c.bf16 %v1093_v14, %v3152_v59  ;;  %v1031_v46 = vadd.f32 1.0, %v2117_v31  ;;  %2124 = vtanh.f32 %v971_v6 }
 0x2fe   :  { %v2119_v38 = vpop.eup %2118  ;;  %v3157_v22 = vmul.f32 %v1062_v27, %v3053_v63 }
 0x2ff   :  { %1208 = vst [vmem:[#allocation10 + $0x60] sm:$0xff] %v1876_v20  ;;  %v1063_v55 = vmul.f32 0.5, %v1031_v46  ;;  %v1032_v45 = vadd.f32 1.0, %v2119_v38 }
 0x300   :  { %v1112_v54 = vpack.c.bf16 %v3157_v22, %v3152_v59 }
 0x301   :  { %v1095_v41 = vmul.f32 %v1063_v55, %v3069_v18  ;;  %v1064_v39 = vmul.f32 0.5, %v1032_v45 }
 0x303   :  { %v1113_v17 = vpack.c.bf16 %v1095_v41, %v1093_v14  ;;  %v1877_v62 = vpack.c.bf16 %v1095_v41, %v3157_v22  ;;  %v3164_v63 = vmul.f32 %v1064_v39, %v3074_v43 }
 0x304   :  { %v2121_v33 = vpop.eup %2120 }
 0x305   :  { %1209 = vst [vmem:[#allocation10 + $0x68] sm:$0xff] %v1877_v62  ;;  %v1033_v51 = vadd.f32 1.0, %v2121_v33 }
 0x306   :  { %v2123_v56 = vpop.eup %2122 }
 0x307   :  { %v2125_v0 = vpop.eup %2124  ;;  %v1065_v2 = vmul.f32 0.5, %v1033_v51  ;;  %v1034_v8 = vadd.f32 1.0, %v2123_v56 }
 0x308   :  { %v1035_v6 = vadd.f32 1.0, %v2125_v0 }
 0x309   :  { %v3167_v31 = vmul.f32 %v1065_v2, %v3077_v5  ;;  %v1066_v27 = vmul.f32 0.5, %v1034_v8 }
 0x30a   :  { %v1067_v18 = vmul.f32 0.5, %v1035_v6 }
 0x30b   :  { %v1878_v14 = vpack.c.bf16 %v3167_v31, %v3164_v63  ;;  %v3172_v20 = vmul.f32 %v1066_v27, %v3123_v10 }
 0x30c   :  { %v1099_v46 = vmul.f32 %v1067_v18, %v3127_v40 }
 0x30d   :  { %1210 = vst [vmem:[#allocation10 + $0x70] sm:$0xff] %v1878_v14  ;;  %v1114_v43 = vpack.c.bf16 %v3172_v20, %v3164_v63 }
 0x30e   :  { %v1115_v38 = vpack.c.bf16 %v1099_v46, %v3167_v31  ;;  %v1879_v55 = vpack.c.bf16 %v1099_v46, %v3172_v20 }
 0x310   :  { %1211 = vst [vmem:[#allocation10 + $0x78] sm:$0xff] %v1879_v55 }
 0x311   :  { %2284 = dma.done.wait [#allocation4 + $0x1], 2048 }
 0x312   :  { %2285 = vsyncadd [#allocation4 + $0x1], 4294965248  ;;  %1270 = vmatprep.mubr.bf16.mxu0 %v1101_v53  ;;  %1318 = vmatprep.mubr.bf16.mxu1 %v1113_v17  ;;  %v1223_v5 = vld [vmem:[#allocation3 + $0x40] sm:$0xff]  ;;  %v1224_v45 = vld [vmem:[#allocation3 + $0x48] sm:$0xff]  ;;  %v3837_v26 = vlaneseq  ;;  %s2301_s3 = smov [#allocation10]  }
 0x313   :  { %v1215_v10 = vld [vmem:[#allocation3] sm:$0xff]  ;;  %1880 = vmatprep.subr.bf16.mxu0 %v1223_v5  ;;  %1944 = vmatprep.subr.bf16.mxu1 %v1223_v5  ;;  %v1216_v40 = vld [vmem:[#allocation3 + $0x8] sm:$0xff]  ;;  %v1225_v41 = vld [vmem:[#allocation3 + $0x50] sm:$0xff]  ;;  %s1795_s27 = sshll.u32 %s2301_s3, 4  ;;  %s1796_s27 = int_to_ptr.vmem [resolvable:$true] %s1795_s27 }
 0x314   :  { %1881 = vmatpush3.bf16.msra.mxu0 %v1215_v10  ;;  %1952 = vmatpush3.bf16.msra.mxu1 %v1215_v10  ;;  %v1217_v62 = vld [vmem:[#allocation3 + $0x10] sm:$0xff]  ;;  %v1226_v39 = vld [vmem:[#allocation3 + $0x58] sm:$0xff]  ;;  %v1227_v28 = vld [vmem:[#allocation3 + $0x60] sm:$0xff]  ;;  %v3219_v29 = vand.u32 127, %v3837_v26  ;;  %s2256_s30 = scalar_lea.vmem %s1796_s27, 2048  ;;  %p2261_p11 = scmp.lt.s32.totalorder %s1796_s27, %s1796_s27 }
 0x315   :  { %1882 = vmatprep.subr.bf16.mxu0 %v1224_v45  ;;  %1945 = vmatprep.subr.bf16.mxu1 %v1224_v45  ;;  %v1218_v32 = vld [vmem:[#allocation3 + $0x18] sm:$0xff]  ;;  %v1219_v53 = vld [vmem:[#allocation3 + $0x20] sm:$0xff]  ;;  %v1228_v17 = vld [vmem:[#allocation3 + $0x68] sm:$0xff]  ;;  %p2257_p10 = scmp.ne.s32.totalorder %s1796_s27, %s2256_s30  ;;  %p2262_p12 = scmp.lt.s32.totalorder %s2256_s30, %s2256_s30 }
 0x316   :  { %v1220_v33 = vld [vmem:[#allocation3 + $0x28] sm:$0xff]  ;;  %v1229_v51 = vld [vmem:[#allocation3 + $0x70] sm:$0xff]  ;;  %v1230_v0 = vld [vmem:[#allocation3 + $0x78] sm:$0xff]  ;;  %vm1337_vm0 = vcmp.lt.s32.totalorder %v3219_v29, 5 }
 0x317   :  { %v1221_v56 = vld [vmem:[#allocation3 + $0x30] sm:$0xff]  ;;  %v1222_v63 = vld [vmem:[#allocation3 + $0x38] sm:$0xff]  ;;  %v3224_v30 = vld [vmem:[%s3832_s6] ss:$0 sm:$0xff]  ;;  %p2263_p13 = por %p2262_p12, %p2261_p11 }
 0x318   :  { %1883 = vmatpush3.bf16.msra.mxu0 %v1216_v40  ;;  %1953 = vmatpush3.bf16.msra.mxu1 %v1216_v40 }
 0x319   :  { %1884 = vmatprep.subr.bf16.mxu0 %v1225_v41  ;;  %1946 = vmatprep.subr.bf16.mxu1 %v1225_v41  ;;  %p2264_p0 = pnand %p2263_p13, %p2257_p10 }
 0x31c   :  { %1885 = vmatpush3.bf16.msra.mxu0 %v1217_v62  ;;  %1954 = vmatpush3.bf16.msra.mxu1 %v1217_v62 }
 0x31d   :  { %1886 = vmatprep.subr.bf16.mxu0 %v1226_v39  ;;  %1947 = vmatprep.subr.bf16.mxu1 %v1226_v39 }
 0x320   :  { %1887 = vmatpush3.bf16.msra.mxu0 %v1218_v32  ;;  %1955 = vmatpush3.bf16.msra.mxu1 %v1218_v32 }
 0x321   :  { %1888 = vmatprep.subr.bf16.mxu0 %v1227_v28  ;;  %1948 = vmatprep.subr.bf16.mxu1 %v1227_v28 }
 0x324   :  { %1889 = vmatpush3.bf16.msra.mxu0 %v1219_v53  ;;  %1956 = vmatpush3.bf16.msra.mxu1 %v1219_v53 }
 0x325   :  { %1890 = vmatprep.subr.bf16.mxu0 %v1228_v17  ;;  %1949 = vmatprep.subr.bf16.mxu1 %v1228_v17 }
 0x328   :  { %1891 = vmatpush3.bf16.msra.mxu0 %v1220_v33  ;;  %1957 = vmatpush3.bf16.msra.mxu1 %v1220_v33 }
 0x329   :  { %1892 = vmatprep.subr.bf16.mxu0 %v1229_v51  ;;  %1950 = vmatprep.subr.bf16.mxu1 %v1229_v51 }
 0x32c   :  { %1893 = vmatpush3.bf16.msra.mxu0 %v1221_v56  ;;  %1958 = vmatpush3.bf16.msra.mxu1 %v1221_v56 }
 0x32d   :  { %1894 = vmatprep.subr.bf16.mxu0 %v1230_v0  ;;  %1951 = vmatprep.subr.bf16.mxu1 %v1230_v0 }
 0x330   :  { %1895 = vmatpush3.bf16.msra.mxu0 %v1222_v63  ;;  %1959 = vmatpush3.bf16.msra.mxu1 %v1222_v63 }
 0x333   :  { %1271 = vmatmul.mubr.bf16.vlgmr.msra.gmra.mrb[32].mxu0 %v1100_v7  ;;  %1319 = vmatmul.mubr.bf16.vlgmr.msra.gmra.mrb[32].mxu1 %v1112_v54 }
 0x334   :  { %1278 = vmatprep.mubr.bf16.mxu0 %v1103_v57  ;;  %1326 = vmatprep.mubr.bf16.mxu1 %v1115_v38 }
 0x33b   :  { %1279 = vmatmul.mubr.bf16.gmra.mrb[36].mxu0 %v1102_v50  ;;  %1327 = vmatmul.mubr.bf16.gmra.mrb[36].mxu1 %v1114_v43 }
 0x33c   :  { %1286 = vmatprep.mubr.bf16.mxu0 %v1105_v49 }
 0x343   :  { %1287 = vmatmul.mubr.bf16.gmra.mrb[40].mxu0 %v1104_v42 }
 0x344   :  { %1294 = vmatprep.mubr.bf16.mxu0 %v1107_v12 }
 0x34b   :  { %1295 = vmatmul.mubr.bf16.gmra.mrb[44].mxu0 %v1106_v21 }
 0x34c   :  { %1302 = vmatprep.mubr.bf16.mxu0 %v1109_v1 }
 0x353   :  { %1303 = vmatmul.mubr.bf16.gmra.mrb[48].mxu0 %v1108_v36 }
 0x354   :  { %1310 = vmatprep.mubr.bf16.mxu0 %v1111_v19 }
 0x35b   :  { %1311 = vmatmul.mubr.bf16.gmra.mrb[52].mxu0 %v1110_v3 }
 0x406   :  { %v1896_v7 = vpop.f32.mrb[32].mxu0  ;;  %v1932_v34 = vpop.f32.mrb[32].mxu1 }
 0x407   :  { %v1897_v11 = vpop.f32.mrb[33].mxu0  ;;  %v1933_v52 = vpop.f32.mrb[33].mxu1 }
 0x408   :  { %v1898_v50 = vadd.f32 %v1897_v11, %v1896_v7  ;;  %v1934_v57 = vadd.f32 %v1933_v52, %v1932_v34  ;;  %v1899_v47 = vpop.f32.mrb[34].mxu0  ;;  %v1935_v60 = vpop.f32.mrb[34].mxu1 }
 0x409   :  { %v1900_v15 = vpop.f32.mrb[35].mxu0  ;;  %v1936_v13 = vpop.f32.mrb[35].mxu1 }
 0x40a   :  { %v1273_v42 = vadd.f32 %v1898_v50, %v3224_v30  ;;  %v1321_v49 = vadd.f32 %v1934_v57, %v3224_v30  ;;  %v1901_v44 = vadd.f32 %v1900_v15, %v1899_v47  ;;  %v1937_v58 = vadd.f32 %v1936_v13, %v1935_v60 }
 0x40c   :  { %v1324_v16 = vadd.f32 %v1937_v58, %v3224_v30  ;;  %v3232_v21 = vsel %vm1337_vm0, %v1273_v42, -inf  ;;  %v3241_v48 = vsel %vm1337_vm0, %v1321_v49, -inf  ;;  %v1276_v4 = vadd.f32 %v1901_v44, %v3224_v30 }
 0x40d   :  { %1354 = vmax.xlane.f32.xlu0 %v3232_v21 }
 0x40e   :  { %v1902_v25 = vpop.f32.mrb[36].mxu0  ;;  %v3237_v12 = vsel %vm1337_vm0, %v1324_v16, -inf  ;;  %v1938_v23 = vpop.f32.mrb[36].mxu1  ;;  %v3254_v8 = vsel %vm1337_vm0, %v1276_v4, -inf }
 0x40f   :  { %1380 = vmax.xlane.f32.xlu1 %v3237_v12  ;;  %v1903_v61 = vpop.f32.mrb[37].mxu0  ;;  %v1939_v36 = vpop.f32.mrb[37].mxu1 }
 0x410   :  { %v1904_v1 = vadd.f32 %v1903_v61, %v1902_v25  ;;  %v1905_v24 = vpop.f32.mrb[38].mxu0  ;;  %v1940_v37 = vadd.f32 %v1939_v36, %v1938_v23  ;;  %v1941_v9 = vpop.f32.mrb[38].mxu1 }
 0x411   :  { %v1906_v3 = vpop.f32.mrb[39].mxu0  ;;  %1378 = vmax.xlane.f32.xlu0 %v3241_v48  ;;  %v1942_v35 = vpop.f32.mrb[39].mxu1 }
 0x412   :  { %v1281_v19 = vadd.f32 %v1904_v1, %v3224_v30  ;;  %v1907_v59 = vadd.f32 %v1906_v3, %v1905_v24  ;;  %v1943_v22 = vadd.f32 %v1942_v35, %v1941_v9  ;;  %v1329_v42 = vadd.f32 %v1940_v37, %v3224_v30 }
 0x414   :  { %v1284_v54 = vadd.f32 %v1907_v59, %v3224_v30  ;;  %v3250_v2 = vsel %vm1337_vm0, %v1281_v19, -inf  ;;  %v1332_v16 = vadd.f32 %v1943_v22, %v3224_v30  ;;  %v3314_v23 = vsel %vm1337_vm0, %v1329_v42, -inf }
 0x415   :  { %1358 = vmax.xlane.f32.xlu1 %v3250_v2  ;;  %1356 = vmax.xlane.f32.xlu0 %v3254_v8 }
 0x416   :  { %v1908_v6 = vpop.f32.mrb[40].mxu0  ;;  %v3260_v14 = vsel %vm1337_vm0, %v1284_v54, -inf  ;;  %v3320_v61 = vsel %vm1337_vm0, %v1332_v16, -inf }
 0x417   :  { %v1909_v31 = vpop.f32.mrb[41].mxu0 }
 0x418   :  { %v1910_v27 = vadd.f32 %v1909_v31, %v1908_v6  ;;  %v1911_v18 = vpop.f32.mrb[42].mxu0 }
 0x419   :  { %v1912_v20 = vpop.f32.mrb[43].mxu0  ;;  %1360 = vmax.xlane.f32.xlu1 %v3260_v14 }
 0x41a   :  { %v1289_v46 = vadd.f32 %v1910_v27, %v3224_v30  ;;  %v1913_v43 = vadd.f32 %v1912_v20, %v1911_v18 }
 0x41c   :  { %v1292_v38 = vadd.f32 %v1913_v43, %v3224_v30  ;;  %v3267_v55 = vsel %vm1337_vm0, %v1289_v46, -inf }
 0x41d   :  { %1362 = vmax.xlane.f32.xlu0 %v3267_v55 }
 0x41e   :  { %v1914_v5 = vpop.f32.mrb[44].mxu0  ;;  %v3272_v10 = vsel %vm1337_vm0, %v1292_v38, -inf }
 0x41f   :  { %v1915_v45 = vpop.f32.mrb[45].mxu0  ;;  %1364 = vmax.xlane.f32.xlu1 %v3272_v10 }
 0x420   :  { %v1916_v40 = vadd.f32 %v1915_v45, %v1914_v5  ;;  %v1917_v41 = vpop.f32.mrb[46].mxu0 }
 0x421   :  { %v1918_v62 = vpop.f32.mrb[47].mxu0 }
 0x422   :  { %v1297_v39 = vadd.f32 %v1916_v40, %v3224_v30  ;;  %v1919_v32 = vadd.f32 %v1918_v62, %v1917_v41 }
 0x424   :  { %v1300_v28 = vadd.f32 %v1919_v32, %v3224_v30  ;;  %v3279_v53 = vsel %vm1337_vm0, %v1297_v39, -inf }
 0x425   :  { %1366 = vmax.xlane.f32.xlu0 %v3279_v53 }
 0x426   :  { %v1920_v17 = vpop.f32.mrb[48].mxu0  ;;  %v3284_v33 = vsel %vm1337_vm0, %v1300_v28, -inf }
 0x427   :  { %v1921_v51 = vpop.f32.mrb[49].mxu0  ;;  %1368 = vmax.xlane.f32.xlu1 %v3284_v33 }
 0x428   :  { %v1922_v56 = vadd.f32 %v1921_v51, %v1920_v17  ;;  %v1923_v0 = vpop.f32.mrb[50].mxu0 }
 0x429   :  { %v1924_v63 = vpop.f32.mrb[51].mxu0 }
 0x42a   :  { %v1305_v26 = vadd.f32 %v1922_v56, %v3224_v30  ;;  %v1925_v7 = vadd.f32 %v1924_v63, %v1923_v0 }
 0x42c   :  { %v1308_v34 = vadd.f32 %v1925_v7, %v3224_v30  ;;  %v3291_v11 = vsel %vm1337_vm0, %v1305_v26, -inf }
 0x42d   :  { %1370 = vmax.xlane.f32.xlu0 %v3291_v11 }
 0x42e   :  { %v1926_v52 = vpop.f32.mrb[52].mxu0  ;;  %v3296_v50 = vsel %vm1337_vm0, %v1308_v34, -inf }
 0x42f   :  { %v1927_v57 = vpop.f32.mrb[53].mxu0  ;;  %1372 = vmax.xlane.f32.xlu1 %v3296_v50 }
 0x430   :  { %v1928_v47 = vadd.f32 %v1927_v57, %v1926_v52  ;;  %v1929_v60 = vpop.f32.mrb[54].mxu0 }
 0x431   :  { %v1930_v15 = vpop.f32.mrb[55].mxu0 }
 0x432   :  { %v1313_v13 = vadd.f32 %v1928_v47, %v3224_v30  ;;  %v1931_v49 = vadd.f32 %v1930_v15, %v1929_v60 }
 0x434   :  { %v1316_v44 = vadd.f32 %v1931_v49, %v3224_v30  ;;  %v3304_v58 = vsel %vm1337_vm0, %v1313_v13, -inf }
 0x435   :  { %1374 = vmax.xlane.f32.xlu0 %v3304_v58 }
 0x436   :  { %v3310_v25 = vsel %vm1337_vm0, %v1316_v44, -inf }
 0x437   :  { %1376 = vmax.xlane.f32.xlu1 %v3310_v25 }
 0x439   :  { %1382 = vmax.xlane.f32.xlu0 %v3314_v23 }
 0x43b   :  { %1384 = vmax.xlane.f32.xlu1 %v3320_v61 }
 0x49a   :  { %v3323_v36 = vpop.xlane.xlu0 %1354 }
 0x49b   :  { %vm1515_vm1 = vcmp.eq.f32.partialorder %v3232_v21, %v3323_v36  ;;  %v1386_v44 = vsub.f32 %v3232_v21, %v3323_v36 }
 0x49c   :  { %v3328_v30 = vsel %vm1515_vm1, %v3219_v29, 128  ;;  %v3331_v1 = vpop.xlane.xlu1 %1380 }
 0x49d   :  { %v1548_v4 = vshra.s32 %v3328_v30, 16  ;;  %vm1528_vm3 = vcmp.eq.f32.partialorder %v3237_v12, %v3331_v1 }
 0x49e   :  { %v3333_v24 = vpop.xlane.xlu0 %1378  ;;  %v3360_v54 = vsel %vm1528_vm3, %v3219_v29, 128 }
 0x49f   :  { %vm1527_vm2 = vcmp.eq.f32.partialorder %v3241_v48, %v3333_v24  ;;  %v3340_v9 = vcvt.s32.f32 %v1548_v4  ;;  %v1730_v43 = vshra.s32 %v3360_v54, 16 }
 0x4a0   :  { %v3338_v37 = vsel %vm1527_vm2, %v3219_v29, 128 }
 0x4a1   :  { %v1716_v3 = vshra.s32 %v3338_v37, 16  ;;  %1551 = vmin.xlane.f32.xlu0 %v3340_v9  ;;  %v3391_v41 = vcvt.s32.f32 %v1730_v43  ;;  %v1402_v43 = vmul.f32 1.442695, %v1386_v44 }
 0x4a2   :  { %v3346_v35 = vpop.xlane.xlu1 %1358  ;;  %v3348_v19 = vpop.xlane.xlu0 %1356 }
 0x4a3   :  { %vm1517_vm4 = vcmp.eq.f32.partialorder %v3250_v2, %v3346_v35  ;;  %vm1516_vm5 = vcmp.eq.f32.partialorder %v3254_v8, %v3348_v19  ;;  %v3357_v22 = vcvt.s32.f32 %v1716_v3  ;;  %v1387_v3 = vsub.f32 %v3254_v8, %v3348_v19 }
 0x4a4   :  { %v3353_v59 = vsel %vm1517_vm4, %v3219_v29, 128  ;;  %v3363_v6 = vsel %vm1516_vm5, %v3219_v29, 128  ;;  %2126 = vpow2.f32 %v1402_v43 }
 0x4a5   :  { %v1576_v31 = vshra.s32 %v3353_v59, 16  ;;  %1719 = vmin.xlane.f32.xlu0 %v3357_v22  ;;  %v1562_v18 = vshra.s32 %v3363_v6, 16  ;;  %v1404_v8 = vmul.f32 1.442695, %v1387_v3 }
 0x4a6   :  { %v3367_v27 = vpop.xlane.xlu1 %1360 }
 0x4a7   :  { %vm1518_vm6 = vcmp.eq.f32.partialorder %v3260_v14, %v3367_v27  ;;  %v3372_v20 = vcvt.s32.f32 %v1576_v31  ;;  %v3374_v46 = vcvt.s32.f32 %v1562_v18  ;;  %v1389_v19 = vsub.f32 %v3260_v14, %v3367_v27 }
 0x4a8   :  { %v3378_v38 = vsel %vm1518_vm6, %v3219_v29, 128  ;;  %2128 = vpow2.f32 %v1404_v8 }
 0x4a9   :  { %1579 = vmin.xlane.f32.xlu0 %v3372_v20  ;;  %1565 = vmin.xlane.f32.xlu1 %v3374_v46  ;;  %v1590_v62 = vshra.s32 %v3378_v38, 16  ;;  %v1408_v44 = vmul.f32 1.442695, %v1389_v19 }
 0x4aa   :  { %v3382_v5 = vpop.xlane.xlu0 %1362 }
 0x4ab   :  { %vm1519_vm7 = vcmp.eq.f32.partialorder %v3267_v55, %v3382_v5  ;;  %v3403_v17 = vcvt.s32.f32 %v1590_v62  ;;  %v1388_v62 = vsub.f32 %v3250_v2, %v3346_v35 }
 0x4ac   :  { %v3387_v45 = vsel %vm1519_vm7, %v3219_v29, 128  ;;  %v3389_v40 = vpop.xlane.xlu1 %1364 }
 0x4ad   :  { %vm1520_vm8 = vcmp.eq.f32.partialorder %v3272_v10, %v3389_v40  ;;  %v1604_v39 = vshra.s32 %v3387_v45, 16  ;;  %1733 = vmin.xlane.f32.xlu1 %v3391_v41 }
 0x4ae   :  { %v3398_v32 = vsel %vm1520_vm8, %v3219_v29, 128 }
 0x4af   :  { %v3401_v28 = vcvt.s32.f32 %v1604_v39  ;;  %v1618_v51 = vshra.s32 %v3398_v32, 16 }
 0x4b1   :  { %1607 = vmin.xlane.f32.xlu0 %v3401_v28  ;;  %1593 = vmin.xlane.f32.xlu1 %v3403_v17  ;;  %v3417_v26 = vcvt.s32.f32 %v1618_v51  ;;  %v1406_v51 = vmul.f32 1.442695, %v1388_v62 }
 0x4b2   :  { %v3408_v56 = vpop.xlane.xlu0 %1366 }
 0x4b3   :  { %vm1521_vm9 = vcmp.eq.f32.partialorder %v3279_v53, %v3408_v56  ;;  %2130 = vpow2.f32 %v1406_v51  ;;  %v1392_v62 = vsub.f32 %v3279_v53, %v3408_v56  ;;  %v3511_v56 = vpop.eup %2126  ;;  %v1399_v51 = vsub.f32 %v3237_v12, %v3331_v1 }
 0x4b4   :  { %v3413_v0 = vsel %vm1521_vm9, %v3219_v29, 128  ;;  %v3415_v63 = vpop.xlane.xlu1 %1368  ;;  %2132 = vpow2.f32 %v1408_v44 }
 0x4b5   :  { %vm1522_vm10 = vcmp.eq.f32.partialorder %v3284_v33, %v3415_v63  ;;  %v1632_v7 = vshra.s32 %v3413_v0, 16  ;;  %1621 = vmin.xlane.f32.xlu1 %v3417_v26 }
 0x4b6   :  { %v3423_v34 = vsel %vm1522_vm10, %v3219_v29, 128 }
 0x4b7   :  { %v3426_v52 = vcvt.s32.f32 %v1632_v7  ;;  %v1646_v57 = vshra.s32 %v3423_v34, 16  ;;  %v1390_v7 = vsub.f32 %v3267_v55, %v3382_v5 }
 0x4b9   :  { %1635 = vmin.xlane.f32.xlu0 %v3426_v52  ;;  %v3430_v47 = vcvt.s32.f32 %v1646_v57  ;;  %v1410_v43 = vmul.f32 1.442695, %v1390_v7 }
 0x4ba   :  { %v3432_v60 = vpop.xlane.xlu0 %1370 }
 0x4bb   :  { %vm1523_vm11 = vcmp.eq.f32.partialorder %v3291_v11, %v3432_v60  ;;  %1649 = vmin.xlane.f32.xlu1 %v3430_v47  ;;  %2134 = vpow2.f32 %v1410_v43  ;;  %v1394_v53 = vsub.f32 %v3291_v11, %v3432_v60  ;;  %v1428_v60 = vmul.f32 1.442695, %v1399_v51 }
 0x4bc   :  { %v3438_v15 = vsel %vm1523_vm11, %v3219_v29, 128  ;;  %v3440_v13 = vpop.xlane.xlu1 %1372  ;;  %v1547_v51 = vand.u32 65535, %v3328_v30 }
 0x4bd   :  { %vm1524_vm12 = vcmp.eq.f32.partialorder %v3296_v50, %v3440_v13  ;;  %v1660_v42 = vshra.s32 %v3438_v15, 16 }
 0x4be   :  { %v3446_v49 = vsel %vm1524_vm12, %v3219_v29, 128 }
 0x4bf   :  { %v3450_v16 = vcvt.s32.f32 %v1660_v42  ;;  %v1674_v4 = vshra.s32 %v3446_v49, 16 }
 0x4c1   :  { %1663 = vmin.xlane.f32.xlu0 %v3450_v16  ;;  %v3456_v31 = vcvt.s32.f32 %v1674_v4  ;;  %v1391_v4 = vsub.f32 %v3272_v10, %v3389_v40  ;;  %v1393_v40 = vsub.f32 %v3284_v33, %v3415_v63  ;;  %v3516_v33 = vpop.eup %2128  ;;  %v1398_v63 = vsub.f32 %v3241_v48, %v3333_v24 }
 0x4c2   :  { %v3458_v18 = vpop.xlane.xlu0 %1374  ;;  %v3521_v11 = vpop.eup %2130  ;;  %v1395_v24 = vsub.f32 %v3296_v50, %v3440_v13 }
 0x4c3   :  { %vm1525_vm13 = vcmp.eq.f32.partialorder %v3304_v58, %v3458_v18  ;;  %1677 = vmin.xlane.f32.xlu1 %v3456_v31  ;;  %v1416_v7 = vmul.f32 1.442695, %v1393_v40  ;;  %v3525_v12 = vpop.eup %2132  ;;  %v1426_v1 = vmul.f32 1.442695, %v1398_v63  ;;  %v1549_v63 = vcvt.s32.f32 %v1547_v51 }
 0x4c4   :  { %v3466_v21 = vsel %vm1525_vm13, %v3219_v29, 128  ;;  %v3468_v36 = vpop.xlane.xlu1 %1376 }
 0x4c5   :  { %vm1526_vm14 = vcmp.eq.f32.partialorder %v3310_v25, %v3468_v36  ;;  %v1688_v39 = vshra.s32 %v3466_v21, 16  ;;  %v3529_v48 = vpop.eup %2134 }
 0x4c6   :  { %v3476_v2 = vsel %vm1526_vm14, %v3219_v29, 128  ;;  %v1383_v35 = vpop.xlane.xlu0 %1382 }
 0x4c7   :  { %vm1529_vm15 = vcmp.eq.f32.partialorder %v3314_v23, %v1383_v35  ;;  %v3484_v27 = vcvt.s32.f32 %v1688_v39  ;;  %v1702_v42 = vshra.s32 %v3476_v2, 16  ;;  %v1414_v39 = vmul.f32 1.442695, %v1392_v62 }
 0x4c8   :  { %v3482_v57 = vsel %vm1529_vm15, %v3219_v29, 128  ;;  %v1385_v14 = vpop.xlane.xlu1 %1384  ;;  %v1397_v62 = vsub.f32 %v3310_v25, %v3468_v36 }
 0x4c9   :  { %vm1530_vm0 = vcmp.eq.f32.partialorder %v3320_v61, %v1385_v14  ;;  %1691 = vmin.xlane.f32.xlu0 %v3484_v27  ;;  %v3494_v55 = vcvt.s32.f32 %v1702_v42  ;;  %v1744_v5 = vshra.s32 %v3482_v57, 16  ;;  %v1418_v42 = vmul.f32 1.442695, %v1394_v53 }
 0x4ca   :  { %v3491_v3 = vsel %vm1530_vm0, %v3219_v29, 128  ;;  %v1412_v29 = vmul.f32 1.442695, %v1391_v4  ;;  %v1401_v44 = vsub.f32 %v3320_v61, %v1385_v14  ;;  %v1400_v4 = vsub.f32 %v3314_v23, %v1383_v35 }
 0x4cb   :  { %v1758_v8 = vshra.s32 %v3491_v3, 16  ;;  %1705 = vmin.xlane.f32.xlu1 %v3494_v55  ;;  %v3501_v10 = vcvt.s32.f32 %v1744_v5  ;;  %v1396_v14 = vsub.f32 %v3304_v58, %v3458_v18  ;;  %v1420_v35 = vmul.f32 1.442695, %v1395_v24 }
 0x4cc   :  { %2136 = vpow2.f32 %v1412_v29  ;;  %v1432_v5 = vmul.f32 1.442695, %v1401_v44  ;;  %v1430_v43 = vmul.f32 1.442695, %v1400_v4  ;;  %v1424_v58 = vmul.f32 1.442695, %v1397_v62 }
 0x4cd   :  { %v3505_v19 = vcvt.s32.f32 %v1758_v8  ;;  %1747 = vmin.xlane.f32.xlu0 %v3501_v10  ;;  %2138 = vpow2.f32 %v1414_v39  ;;  %v1422_v13 = vmul.f32 1.442695, %v1396_v14  ;;  %v1561_v4 = vand.u32 65535, %v3363_v6 }
 0x4ce   :  { %2140 = vpow2.f32 %v1416_v7  ;;  %v1575_v24 = vand.u32 65535, %v3353_v59 }
 0x4cf   :  { %1761 = vmin.xlane.f32.xlu1 %v3505_v19  ;;  %2142 = vpow2.f32 %v1418_v42  ;;  %v1715_v42 = vand.u32 65535, %v3338_v37  ;;  %v1563_v14 = vcvt.s32.f32 %v1561_v4 }
 0x4d0   :  { %2144 = vpow2.f32 %v1428_v60 }
 0x4d1   :  { %1434 = vadd.xlane.f32.xlu0 %v3511_v56  ;;  %2146 = vpow2.f32 %v1426_v1  ;;  %v1717_v1 = vcvt.s32.f32 %v1715_v42 }
 0x4d2   :  { %2148 = vpow2.f32 %v1432_v5 }
 0x4d3   :  { %1436 = vadd.xlane.f32.xlu1 %v3516_v33  ;;  %2150 = vpow2.f32 %v1430_v43  ;;  %v1729_v43 = vand.u32 65535, %v3360_v54 }
 0x4d4   :  { %2152 = vpow2.f32 %v1420_v35 }
 0x4d5   :  { %1438 = vadd.xlane.f32.xlu0 %v3521_v11  ;;  %2154 = vpow2.f32 %v1422_v13  ;;  %v1731_v62 = vcvt.s32.f32 %v1729_v43  ;;  %v1589_v13 = vand.u32 65535, %v3378_v38 }
 0x4d6   :  { %v3534_v61 = vpop.eup %2136  ;;  %2156 = vpow2.f32 %v1424_v58 }
 0x4d7   :  { %1440 = vadd.xlane.f32.xlu1 %v3525_v12  ;;  %v3539_v23 = vpop.eup %2138  ;;  %v1591_v51 = vcvt.s32.f32 %v1589_v13 }
 0x4d8   :  { %v3544_v50 = vpop.eup %2140 }
 0x4d9   :  { %1442 = vadd.xlane.f32.xlu0 %v3529_v48  ;;  %v3547_v8 = vpop.eup %2142 }
 0x4da   :  { %v3550_v18 = vpop.eup %2144 }
 0x4db   :  { %1444 = vadd.xlane.f32.xlu1 %v3534_v61  ;;  %v3553_v25 = vpop.eup %2146 }
 0x4dc   :  { %v3556_v36 = vpop.eup %2148 }
 0x4dd   :  { %1446 = vadd.xlane.f32.xlu0 %v3539_v23  ;;  %v3559_v29 = vpop.eup %2150 }
 0x4de   :  { %v3562_v40 = vpop.eup %2152 }
 0x4df   :  { %1448 = vadd.xlane.f32.xlu1 %v3544_v50  ;;  %v3565_v39 = vpop.eup %2154 }
 0x4e0   :  { %v3568_v53 = vpop.eup %2156 }
 0x4e1   :  { %1450 = vadd.xlane.f32.xlu0 %v3547_v8 }
 0x4e3   :  { %1460 = vadd.xlane.f32.xlu1 %v3550_v18 }
 0x4e5   :  { %1458 = vadd.xlane.f32.xlu0 %v3553_v25 }
 0x4e7   :  { %1464 = vadd.xlane.f32.xlu1 %v3556_v36 }
 0x4e9   :  { %1462 = vadd.xlane.f32.xlu0 %v3559_v29 }
 0x4eb   :  { %1452 = vadd.xlane.f32.xlu1 %v3562_v40 }
 0x4ed   :  { %1454 = vadd.xlane.f32.xlu0 %v3565_v39 }
 0x4ef   :  { %1456 = vadd.xlane.f32.xlu1 %v3568_v53 }
 0x52e   :  { %v3572_v7 = vpop.xlane.xlu0 %1551 }
 0x52f   :  { %vm1553_vm1 = vcmp.eq.f32.partialorder %v3340_v9, %v3572_v7  ;;  %v1577_v9 = vcvt.s32.f32 %v1575_v24 }
 0x530   :  { %v1554_v60 = vsel %vm1553_vm1, %v1549_v63, inf  ;;  %vm1498_vm1 = vcmask 39936  }
 0x531   :  { %1555 = vmin.xlane.f32.xlu0 %v1554_v60 }
 0x532   :  { %v3577_v44 = vpop.xlane.xlu0 %1719 }
 0x533   :  { %vm1721_vm2 = vcmp.eq.f32.partialorder %v3357_v22, %v3577_v44  ;;  %v1603_v22 = vand.u32 65535, %v3387_v45  ;;  %v1617_v45 = vand.u32 65535, %v3398_v32 }
 0x534   :  { %v1722_v30 = vsel %vm1721_vm2, %v1717_v1, inf  ;;  %v1645_v1 = vand.u32 65535, %v3423_v34  ;;  %v1673_v34 = vand.u32 65535, %v3446_v49  ;;  %v1701_v49 = vand.u32 65535, %v3476_v2 }
 0x535   :  { %1723 = vmin.xlane.f32.xlu0 %v1722_v30  ;;  %v1605_v58 = vcvt.s32.f32 %v1603_v22  ;;  %v1619_v60 = vcvt.s32.f32 %v1617_v45 }
 0x536   :  { %v3583_v5 = vpop.xlane.xlu1 %1565  ;;  %v3585_v37 = vpop.xlane.xlu0 %1579 }
 0x537   :  { %vm1567_vm3 = vcmp.eq.f32.partialorder %v3374_v46, %v3583_v5  ;;  %vm1581_vm4 = vcmp.eq.f32.partialorder %v3372_v20, %v3585_v37 }
 0x538   :  { %v1568_v59 = vsel %vm1567_vm3, %v1563_v14, inf  ;;  %v1582_v6 = vsel %vm1581_vm4, %v1577_v9, inf }
 0x539   :  { %1569 = vmin.xlane.f32.xlu1 %v1568_v59  ;;  %1583 = vmin.xlane.f32.xlu0 %v1582_v6  ;;  %v1675_v59 = vcvt.s32.f32 %v1673_v34 }
 0x53a   :  { %v3593_v35 = vpop.xlane.xlu1 %1733 }
 0x53b   :  { %vm1735_vm5 = vcmp.eq.f32.partialorder %v3391_v41, %v3593_v35  ;;  %v1631_v41 = vand.u32 65535, %v3413_v0  ;;  %v1647_v0 = vcvt.s32.f32 %v1645_v1 }
 0x53c   :  { %v1736_v54 = vsel %vm1735_vm5, %v1731_v62, inf  ;;  %v1743_v62 = vand.u32 65535, %v3482_v57 }
 0x53d   :  { %1737 = vmin.xlane.f32.xlu1 %v1736_v54  ;;  %v1633_v4 = vcvt.s32.f32 %v1631_v41  ;;  %v1703_v54 = vcvt.s32.f32 %v1701_v49 }
 0x53e   :  { %v3598_v46 = vpop.xlane.xlu0 %1607  ;;  %v3600_v20 = vpop.xlane.xlu1 %1593 }
 0x53f   :  { %vm1609_vm6 = vcmp.eq.f32.partialorder %v3401_v28, %v3598_v46  ;;  %vm1595_vm7 = vcmp.eq.f32.partialorder %v3403_v17, %v3600_v20 }
 0x540   :  { %v1610_v38 = vsel %vm1609_vm6, %v1605_v58, inf  ;;  %v1596_v63 = vsel %vm1595_vm7, %v1591_v51, inf  ;;  %v1745_v58 = vcvt.s32.f32 %v1743_v62 }
 0x541   :  { %1611 = vmin.xlane.f32.xlu0 %v1610_v38  ;;  %1597 = vmin.xlane.f32.xlu1 %v1596_v63 }
 0x542   :  { %v3608_v42 = vpop.xlane.xlu1 %1621 }
 0x543   :  { %vm1623_vm8 = vcmp.eq.f32.partialorder %v3417_v26, %v3608_v42  ;;  %v1659_v26 = vand.u32 65535, %v3438_v15  ;;  %v1687_v15 = vand.u32 65535, %v3466_v21 }
 0x544   :  { %v1624_v28 = vsel %vm1623_vm8, %v1619_v60, inf }
 0x545   :  { %1625 = vmin.xlane.f32.xlu1 %v1624_v28  ;;  %v1661_v9 = vcvt.s32.f32 %v1659_v26  ;;  %v1689_v22 = vcvt.s32.f32 %v1687_v15 }
 0x546   :  { %v3613_v32 = vpop.xlane.xlu0 %1635 }
 0x547   :  { %vm1637_vm9 = vcmp.eq.f32.partialorder %v3426_v52, %v3613_v32 }
 0x548   :  { %v3617_v17 = vpop.xlane.xlu1 %1649  ;;  %v1638_v24 = vsel %vm1637_vm9, %v1633_v4, inf }
 0x549   :  { %1639 = vmin.xlane.f32.xlu0 %v1638_v24  ;;  %vm1651_vm10 = vcmp.eq.f32.partialorder %v3430_v47, %v3617_v17 }
 0x54a   :  { %v1652_v30 = vsel %vm1651_vm10, %v1647_v0, inf }
 0x54b   :  { %1653 = vmin.xlane.f32.xlu1 %v1652_v30 }
 0x54e   :  { %v3623_v14 = vpop.xlane.xlu0 %1663 }
 0x54f   :  { %vm1665_vm11 = vcmp.eq.f32.partialorder %v3450_v16, %v3623_v14 }
 0x550   :  { %v3627_v52 = vpop.xlane.xlu1 %1677  ;;  %v1666_v43 = vsel %vm1665_vm11, %v1661_v9, inf }
 0x551   :  { %1667 = vmin.xlane.f32.xlu0 %v1666_v43  ;;  %vm1679_vm12 = vcmp.eq.f32.partialorder %v3456_v31, %v3627_v52  ;;  %v1757_v31 = vand.u32 65535, %v3491_v3 }
 0x552   :  { %v1680_v47 = vsel %vm1679_vm12, %v1675_v59, inf }
 0x553   :  { %1681 = vmin.xlane.f32.xlu1 %v1680_v47  ;;  %v1759_v51 = vcvt.s32.f32 %v1757_v31 }
 0x556   :  { %v3633_v6 = vpop.xlane.xlu0 %1691 }
 0x557   :  { %vm1693_vm13 = vcmp.eq.f32.partialorder %v3484_v27, %v3633_v6 }
 0x558   :  { %v3638_v16 = vpop.xlane.xlu1 %1705  ;;  %v1694_v13 = vsel %vm1693_vm13, %v1689_v22, inf }
 0x559   :  { %1695 = vmin.xlane.f32.xlu0 %v1694_v13  ;;  %vm1707_vm14 = vcmp.eq.f32.partialorder %v3494_v55, %v3638_v16 }
 0x55a   :  { %v3643_v21 = vpop.xlane.xlu0 %1747  ;;  %v1708_v2 = vsel %vm1707_vm14, %v1703_v54, inf }
 0x55b   :  { %1709 = vmin.xlane.f32.xlu1 %v1708_v2  ;;  %vm1749_vm15 = vcmp.eq.f32.partialorder %v3501_v10, %v3643_v21 }
 0x55c   :  { %v3647_v57 = vpop.xlane.xlu1 %1761  ;;  %v1750_v27 = vsel %vm1749_vm15, %v1745_v58, inf }
 0x55d   :  { %1751 = vmin.xlane.f32.xlu0 %v1750_v27  ;;  %vm1763_vm0 = vcmp.eq.f32.partialorder %v3505_v19, %v3647_v57 }
 0x55e   :  { %v1435_v3 = vpop.xlane.xlu0 %1434  ;;  %v1764_v45 = vsel %vm1763_vm0, %v1759_v51, inf }
 0x55f   :  { %2158 = vrcp.f32 %v1435_v3  ;;  %1765 = vmin.xlane.f32.xlu1 %v1764_v45 }
 0x560   :  { %v1437_v55 = vpop.xlane.xlu1 %1436 }
 0x561   :  { %2160 = vrcp.f32 %v1437_v55 }
 0x562   :  { %v1439_v38 = vpop.xlane.xlu0 %1438 }
 0x563   :  { %2162 = vrcp.f32 %v1439_v38 }
 0x564   :  { %v1441_v63 = vpop.xlane.xlu1 %1440 }
 0x565   :  { %2164 = vrcp.f32 %v1441_v63 }
 0x566   :  { %v1443_v41 = vpop.xlane.xlu0 %1442 }
 0x567   :  { %2166 = vrcp.f32 %v1443_v41 }
 0x568   :  { %v1445_v10 = vpop.xlane.xlu1 %1444 }
 0x569   :  { %v2159_v60 = vpop.eup %2158  ;;  %2168 = vrcp.f32 %v1445_v10 }
 0x56a   :  { %v1482_v1 = vmul.f32 %v2159_v60, %v3511_v56  ;;  %v1447_v28 = vpop.xlane.xlu0 %1446 }
 0x56b   :  { %v2161_v19 = vpop.eup %2160  ;;  %2170 = vrcp.f32 %v1447_v28 }
 0x56c   :  { %1499 = vst.msk [vmem:[%s3833_s7] sm:$0xff] %vm1498_vm1, %v1482_v1  ;;  %v1483_v4 = vmul.f32 %v2161_v19, %v3516_v33  ;;  %v1449_v24 = vpop.xlane.xlu1 %1448 }
 0x56d   :  { %v2163_v0 = vpop.eup %2162  ;;  %2172 = vrcp.f32 %v1449_v24 }
 0x56e   :  { %1500 = vst.msk [vmem:[%s3833_s7 + $0x8] sm:$0xff] %vm1498_vm1, %v1483_v4  ;;  %v1484_v56 = vmul.f32 %v2163_v0, %v3521_v11  ;;  %v1451_v30 = vpop.xlane.xlu0 %1450 }
 0x56f   :  { %v2165_v26 = vpop.eup %2164  ;;  %2174 = vrcp.f32 %v1451_v30 }
 0x570   :  { %1501 = vst.msk [vmem:[%s3833_s7 + $0x10] sm:$0xff] %vm1498_vm1, %v1484_v56  ;;  %v1485_v33 = vmul.f32 %v2165_v26, %v3525_v12  ;;  %v1461_v34 = vpop.xlane.xlu1 %1460 }
 0x571   :  { %v2167_v9 = vpop.eup %2166  ;;  %2176 = vrcp.f32 %v1461_v34 }
 0x572   :  { %1502 = vst.msk [vmem:[%s3833_s7 + $0x18] sm:$0xff] %vm1498_vm1, %v1485_v33  ;;  %v1486_v11 = vmul.f32 %v2167_v9, %v3529_v48  ;;  %v1459_v43 = vpop.xlane.xlu0 %1458 }
 0x573   :  { %v2169_v59 = vpop.eup %2168  ;;  %2178 = vrcp.f32 %v1459_v43 }
 0x574   :  { %1503 = vst.msk [vmem:[%s3833_s7 + $0x20] sm:$0xff] %vm1498_vm1, %v1486_v11  ;;  %v1487_v12 = vmul.f32 %v2169_v59, %v3534_v61  ;;  %v1465_v47 = vpop.xlane.xlu1 %1464 }
 0x575   :  { %2267 = shalt.err (!%p2264_p0)
}
 0x576   :  { %s2268_s0 = scalar_lea.hbm %s3834_s8, 2048 }
 0x577   :  { %p2269_p1 = scmp.ne.s32.totalorder %s3834_s8, %s2268_s0  ;;  %p2272_p2 = scmp.lt.u32.totalorder %s2268_s0, %s3834_s8 }
 0x579   :  { %p2274_p3 = pnand %p2272_p2, %p2269_p1 }
 0x57b   :  { %2277 = shalt.err (!%p2274_p3)
}
 0x57c   :  { %1801 = dma.vmem_to_hbm [thread:$0]  %s1796_s27, 2048, %s3834_s8, [#allocation7], %s2289_s19, %s2289_s19, %s2290_s20   ;;  %v2171_v48 = vpop.eup %2170  ;;  %2180 = vrcp.f32 %v1465_v47  ;;  %v1463_v15 = vpop.xlane.xlu0 %1462  ;;  %v1726_v10 = vcvt.f32.s32 %v3577_v44  ;;  %vm1771_vm2 = vcmask 7168   ;;  %v1572_v1 = vcvt.f32.s32 %v3583_v5 }
 0x57d   :  { %1504 = vst.msk [vmem:[%s3833_s7 + $0x28] sm:$0xff] %vm1498_vm1, %v1487_v12  ;;  %v1488_v61 = vmul.f32 %v2171_v48, %v3539_v23  ;;  %v2173_v49 = vpop.eup %2172  ;;  %2182 = vrcp.f32 %v1463_v15  ;;  %v1453_v62 = vpop.xlane.xlu1 %1452  ;;  %v1740_v30 = vcvt.f32.s32 %v3593_v35  ;;  %v1614_v34 = vcvt.f32.s32 %v3598_v46 }
 0x57e   :  { %v1489_v22 = vmul.f32 %v2173_v49, %v3544_v50  ;;  %v2175_v13 = vpop.eup %2174  ;;  %2184 = vrcp.f32 %v1453_v62  ;;  %v1727_v19 = vshll.u32 %v1726_v10, 16  ;;  %v1573_v24 = vshll.u32 %v1572_v1, 16 }
 0x57f   :  { %1505 = vst.msk [vmem:[%s3833_s7 + $0x30] sm:$0xff] %vm1498_vm1, %v1488_v61  ;;  %v1490_v23 = vmul.f32 %v2175_v13, %v3547_v8  ;;  %v2177_v31 = vpop.eup %2176  ;;  %v1741_v11 = vshll.u32 %v1740_v30, 16  ;;  %v1600_v43 = vcvt.f32.s32 %v3600_v20  ;;  %v1615_v47 = vshll.u32 %v1614_v34, 16 }
 0x580   :  { %1506 = vst.msk [vmem:[%s3833_s7 + $0x38] sm:$0xff] %vm1498_vm1, %v1489_v22  ;;  %v1455_v54 = vpop.xlane.xlu0 %1454  ;;  %v1495_v50 = vmul.f32 %v2177_v31, %v3550_v18  ;;  %v2179_v58 = vpop.eup %2178  ;;  %v1628_v15 = vcvt.f32.s32 %v3608_v42  ;;  %v1642_v62 = vcvt.f32.s32 %v3613_v32 }
 0x581   :  { %2186 = vrcp.f32 %v1455_v54  ;;  %1507 = vst.msk [vmem:[%s3833_s7 + $0x40] sm:$0xff] %vm1498_vm1, %v1490_v23  ;;  %v1457_v2 = vpop.xlane.xlu1 %1456  ;;  %v1494_v8 = vmul.f32 %v2179_v58, %v3553_v25  ;;  %v1601_v61 = vshll.u32 %v1600_v43, 16  ;;  %v1656_v54 = vcvt.f32.s32 %v3617_v17 }
 0x582   :  { %2188 = vrcp.f32 %v1457_v2  ;;  %1512 = vst.msk [vmem:[%s3833_s7 + $0x68] sm:$0xff] %vm1498_vm1, %v1495_v50  ;;  %v1629_v23 = vshll.u32 %v1628_v15, 16  ;;  %v1643_v2 = vshll.u32 %v1642_v62, 16 }
 0x583   :  { %1511 = vst.msk [vmem:[%s3833_s7 + $0x60] sm:$0xff] %vm1498_vm1, %v1494_v8  ;;  %v1657_v8 = vshll.u32 %v1656_v54, 16 }
 0x586   :  { %v2181_v27 = vpop.eup %2180 }
 0x587   :  { %v1497_v51 = vmul.f32 %v2181_v27, %v3556_v36  ;;  %v2183_v3 = vpop.eup %2182 }
 0x588   :  { %v1496_v18 = vmul.f32 %v2183_v3, %v3559_v29  ;;  %v2185_v45 = vpop.eup %2184  ;;  %v1670_v3 = vcvt.f32.s32 %v3623_v14 }
 0x589   :  { %1514 = vst.msk [vmem:[%s3833_s7 + $0x78] sm:$0xff] %vm1498_vm1, %v1497_v51  ;;  %v1491_v25 = vmul.f32 %v2185_v45, %v3562_v40  ;;  %v1558_v40 = vcvt.f32.s32 %v3572_v7 }
 0x58a   :  { %1513 = vst.msk [vmem:[%s3833_s7 + $0x70] sm:$0xff] %vm1498_vm1, %v1496_v18  ;;  %v1684_v18 = vcvt.f32.s32 %v3627_v52  ;;  %v1698_v52 = vcvt.f32.s32 %v3633_v6 }
 0x58b   :  { %v2187_v55 = vpop.eup %2186  ;;  %1508 = vst.msk [vmem:[%s3833_s7 + $0x48] sm:$0xff] %vm1498_vm1, %v1491_v25  ;;  %v1559_v41 = vshll.u32 %v1558_v40, 16  ;;  %v1671_v25 = vshll.u32 %v1670_v3, 16 }
 0x58c   :  { %v1492_v36 = vmul.f32 %v2187_v55, %v3565_v39  ;;  %v2189_v38 = vpop.eup %2188  ;;  %v1699_v10 = vshll.u32 %v1698_v52, 16 }
 0x58d   :  { %v1493_v29 = vmul.f32 %v2189_v38, %v3568_v53  ;;  %v1586_v53 = vcvt.f32.s32 %v3585_v37  ;;  %v1685_v38 = vshll.u32 %v1684_v18, 16 }
 0x58e   :  { %1509 = vst.msk [vmem:[%s3833_s7 + $0x50] sm:$0xff] %vm1498_vm1, %v1492_v36 }
 0x58f   :  { %1510 = vst.msk [vmem:[%s3833_s7 + $0x58] sm:$0xff] %vm1498_vm1, %v1493_v29  ;;  %v1587_v44 = vshll.u32 %v1586_v53, 16 }
 0x5be   :  { %v1556_v63 = vpop.xlane.xlu0 %1555 }
 0x5bf   :  { %v1557_v39 = vcvt.f32.s32 %v1556_v63  ;;  %v1712_v63 = vcvt.f32.s32 %v3638_v16 }
 0x5c1   :  { %v1560_v60 = vadd.s32 %v1559_v41, %v1557_v39  ;;  %v1754_v39 = vcvt.f32.s32 %v3643_v21 }
 0x5c2   :  { %v1724_v28 = vpop.xlane.xlu0 %1723 }
 0x5c3   :  { %1772 = vst.msk [vmem:[%s3835_s9] sm:$0xff] %vm1771_vm2, %v1560_v60  ;;  %v1725_v4 = vcvt.f32.s32 %v1724_v28  ;;  %v1713_v28 = vshll.u32 %v1712_v63, 16  ;;  %v1755_v6 = vshll.u32 %v1754_v39, 16 }
 0x5c5   :  { %v1728_v7 = vadd.s32 %v1727_v19, %v1725_v4  ;;  %v1768_v19 = vcvt.f32.s32 %v3647_v57 }
 0x5c6   :  { %v1570_v0 = vpop.xlane.xlu1 %1569  ;;  %v1584_v56 = vpop.xlane.xlu0 %1583 }
 0x5c7   :  { %1784 = vst.msk [vmem:[%s3835_s9 + $0x60] sm:$0xff] %vm1771_vm2, %v1728_v7  ;;  %v1571_v5 = vcvt.f32.s32 %v1570_v0  ;;  %v1585_v37 = vcvt.f32.s32 %v1584_v56  ;;  %v1769_v56 = vshll.u32 %v1768_v19, 16 }
 0x5c9   :  { %v1574_v26 = vadd.s32 %v1573_v24, %v1571_v5  ;;  %v1588_v33 = vadd.s32 %v1587_v44, %v1585_v37 }
 0x5ca   :  { %v1738_v9 = vpop.xlane.xlu1 %1737 }
 0x5cb   :  { %1773 = vst.msk [vmem:[%s3835_s9 + $0x8] sm:$0xff] %vm1771_vm2, %v1574_v26  ;;  %1774 = vst.msk [vmem:[%s3835_s9 + $0x10] sm:$0xff] %vm1771_vm2, %v1588_v33  ;;  %v1739_v35 = vcvt.f32.s32 %v1738_v9 }
 0x5cd   :  { %v1742_v59 = vadd.s32 %v1741_v11, %v1739_v35 }
 0x5ce   :  { %v1612_v12 = vpop.xlane.xlu0 %1611  ;;  %v1598_v48 = vpop.xlane.xlu1 %1597 }
 0x5cf   :  { %v1613_v46 = vcvt.f32.s32 %v1612_v12  ;;  %1785 = vst.msk [vmem:[%s3835_s9 + $0x68] sm:$0xff] %vm1771_vm2, %v1742_v59  ;;  %v1599_v20 = vcvt.f32.s32 %v1598_v48 }
 0x5d1   :  { %v1616_v49 = vadd.s32 %v1615_v47, %v1613_v46  ;;  %v1602_v22 = vadd.s32 %v1601_v61, %v1599_v20 }
 0x5d2   :  { %v1626_v13 = vpop.xlane.xlu1 %1625 }
 0x5d3   :  { %1776 = vst.msk [vmem:[%s3835_s9 + $0x20] sm:$0xff] %vm1771_vm2, %v1616_v49  ;;  %1775 = vst.msk [vmem:[%s3835_s9 + $0x18] sm:$0xff] %vm1771_vm2, %v1602_v22  ;;  %v1627_v42 = vcvt.f32.s32 %v1626_v13 }
 0x5d5   :  { %v1630_v31 = vadd.s32 %v1629_v23, %v1627_v42 }
 0x5d6   :  { %v1640_v50 = vpop.xlane.xlu0 %1639 }
 0x5d7   :  { %v1641_v58 = vcvt.f32.s32 %v1640_v50  ;;  %1777 = vst.msk [vmem:[%s3835_s9 + $0x28] sm:$0xff] %vm1771_vm2, %v1630_v31 }
 0x5d8   :  { %v1654_v32 = vpop.xlane.xlu1 %1653 }
 0x5d9   :  { %v1644_v27 = vadd.s32 %v1643_v2, %v1641_v58  ;;  %v1655_v51 = vcvt.f32.s32 %v1654_v32 }
 0x5db   :  { %1778 = vst.msk [vmem:[%s3835_s9 + $0x30] sm:$0xff] %vm1771_vm2, %v1644_v27  ;;  %v1658_v17 = vadd.s32 %v1657_v8, %v1655_v51 }
 0x5dd   :  { %1779 = vst.msk [vmem:[%s3835_s9 + $0x38] sm:$0xff] %vm1771_vm2, %v1658_v17 }
 0x5de   :  { %v1668_v45 = vpop.xlane.xlu0 %1667 }
 0x5df   :  { %v1669_v55 = vcvt.f32.s32 %v1668_v45 }
 0x5e0   :  { %v1682_v36 = vpop.xlane.xlu1 %1681 }
 0x5e1   :  { %v1672_v29 = vadd.s32 %v1671_v25, %v1669_v55  ;;  %v1683_v14 = vcvt.f32.s32 %v1682_v36 }
 0x5e3   :  { %1780 = vst.msk [vmem:[%s3835_s9 + $0x40] sm:$0xff] %vm1771_vm2, %v1672_v29  ;;  %v1686_v40 = vadd.s32 %v1685_v38, %v1683_v14 }
 0x5e5   :  { %1781 = vst.msk [vmem:[%s3835_s9 + $0x48] sm:$0xff] %vm1771_vm2, %v1686_v40 }
 0x5e6   :  { %v1696_v41 = vpop.xlane.xlu0 %1695 }
 0x5e7   :  { %v1697_v60 = vcvt.f32.s32 %v1696_v41 }
 0x5e8   :  { %v1710_v1 = vpop.xlane.xlu1 %1709 }
 0x5e9   :  { %v1700_v53 = vadd.s32 %v1699_v10, %v1697_v60  ;;  %v1711_v4 = vcvt.f32.s32 %v1710_v1 }
 0x5ea   :  { %v1752_v7 = vpop.xlane.xlu0 %1751 }
 0x5eb   :  { %1782 = vst.msk [vmem:[%s3835_s9 + $0x50] sm:$0xff] %vm1771_vm2, %v1700_v53  ;;  %v1714_v24 = vadd.s32 %v1713_v28, %v1711_v4  ;;  %v1753_v16 = vcvt.f32.s32 %v1752_v7 }
 0x5ec   :  { %v1766_v0 = vpop.xlane.xlu1 %1765 }
 0x5ed   :  { %1783 = vst.msk [vmem:[%s3835_s9 + $0x58] sm:$0xff] %vm1771_vm2, %v1714_v24  ;;  %v1756_v21 = vadd.s32 %v1755_v6, %v1753_v16  ;;  %v1767_v57 = vcvt.f32.s32 %v1766_v0 }
 0x5ef   :  { %1786 = vst.msk [vmem:[%s3835_s9 + $0x70] sm:$0xff] %vm1771_vm2, %v1756_v21  ;;  %v1770_v44 = vadd.s32 %v1769_v56, %v1767_v57 }
 0x5f1   :  { %1787 = vst.msk [vmem:[%s3835_s9 + $0x78] sm:$0xff] %vm1771_vm2, %v1770_v44 }
 0x5f2   :  { %2286 = dma.done.wait [#allocation7], 2048  }
 0x5f3   :  { %2287 = vsyncadd [#allocation7], 4294965248 }
 0x5f4   :  { %1811 = vsyncpa [#allocation6], 1 }
 0x5f5   :  { %1812 = vsyncpa [#allocation9], 1 }
 0x5f6   :  { %1813 = vsyncpa [#allocation7], 1 }
 0x5f7   :  { %1814 = vsyncmov [#allocation4] }
 0x5fa   :  { %s1815_s7 = vpop.sfrf %1814 }
 0x5fb   :  { %p1862_p4 = scmp.ne.s32.totalorder %s1815_s7, 0 }
 0x5fd   :  { %1819 = shalt.err (%p1862_p4)  }
 0x5fe   :  { %1821 = vsyncmov [#allocation4 + $0x1] }
 0x601   :  { %s1822_s13 = vpop.sfrf %1821 }
 0x602   :  { %p1863_p5 = scmp.ne.s32.totalorder %s1822_s13, 0 }
 0x604   :  { %1826 = shalt.err (%p1863_p5)  }

</bundles_post_ra>
